<compile_context>
chip_gen: v7x
topology: tpu7x:2x2x1
jax: 0.10.0
libtpu: 0.0.40
codegen_flags: <defaults>
</compile_context>

<pallas_src>
import functools

import jax
import jax.numpy as jnp
from jax.experimental import pallas as pl
from jax.experimental.pallas import tpu as pltpu

P_DROP = 0.1


def _make_kernel(scale):
    def kernel(x_ref, m_ref, w_ref, b_ref, o_ref):
        # dropout: mask is {0,1}; the 1/(1-p) scale is applied to the small
        # accumulator below, not to the full activation.
        x_dropped = x_ref[...] * m_ref[...].astype(jnp.float32)   # (C_in, HWp)
        # 1x1 conv == matmul over the channel dim (MXU), f32 accumulate.
        acc = jnp.dot(w_ref[...], x_dropped,
                      preferred_element_type=jnp.float32)         # (C_out, HWp)
        o_ref[...] = acc * jnp.float32(scale) + b_ref[...]
    return kernel


def dropout_conv1x1(x_nchw, weight, bias, key, p=P_DROP, training=True):
    """x_nchw: (1, C_in, H, W) f32; weight: (C_out, C_in, 1, 1); bias: (C_out,)."""
    N, C_in, H, W = x_nchw.shape
    assert N == 1, "kernel written for batch=1 (as in the reference module)"
    C_out = weight.shape[0]
    HW = H * W
    HW_pad = pl.cdiv(HW, 128) * 128          # lane-dense: 784 -> 896

    x2d = x_nchw.reshape(C_in, HW).astype(jnp.float32)
    x2d = jnp.pad(x2d, ((0, 0), (0, HW_pad - HW)))
    w2d = weight.reshape(C_out, C_in).astype(jnp.float32)
    b2d = bias.reshape(C_out, 1).astype(jnp.float32)

    if training:
        keep = jax.random.bernoulli(key, 1.0 - p, (C_in, HW_pad))
        mask = keep.astype(jnp.bfloat16)
        scale = 1.0 / (1.0 - p)
    else:
        mask = jnp.ones((C_in, HW_pad), dtype=jnp.bfloat16)
        scale = 1.0

    bytes_accessed = (
        x2d.size * 4 + mask.size * 2 + w2d.size * 4 + b2d.size * 4
        + C_out * HW_pad * 4
    )
    out2d = pl.pallas_call(
        _make_kernel(scale),
        out_shape=jax.ShapeDtypeStruct((C_out, HW_pad), jnp.float32),
        in_specs=[
            pl.BlockSpec(memory_space=pltpu.MemorySpace.VMEM),   # x2d
            pl.BlockSpec(memory_space=pltpu.MemorySpace.VMEM),   # mask
            pl.BlockSpec(memory_space=pltpu.MemorySpace.VMEM),   # w2d
            pl.BlockSpec(memory_space=pltpu.MemorySpace.VMEM),   # b2d
        ],
        out_specs=pl.BlockSpec(memory_space=pltpu.MemorySpace.VMEM),
        cost_estimate=pl.CostEstimate(
            flops=2 * C_out * C_in * HW_pad,
            bytes_accessed=bytes_accessed,
            transcendentals=0,
        ),
    )(x2d, mask, w2d, b2d)

    return out2d[:, :HW].reshape(N, C_out, H, W)


if __name__ == "__main__":
    key = jax.random.PRNGKey(0)
    kx, kw, kb, kdrop = jax.random.split(key, 4)

    N, C_in, H, W = 1, 256, 28, 28
    C_out = 21

    # deterministic inputs / parameters (PyTorch-Conv2d-style uniform init bounds)
    x = jax.random.normal(kx, (N, C_in, H, W), dtype=jnp.float32)
    bound = 1.0 / jnp.sqrt(jnp.float32(C_in))  # fan_in = C_in * 1 * 1
    weight = jax.random.uniform(kw, (C_out, C_in, 1, 1), dtype=jnp.float32,
                                minval=-bound, maxval=bound)
    bias = jax.random.uniform(kb, (C_out,), dtype=jnp.float32,
                              minval=-bound, maxval=bound)

    out = dropout_conv1x1(x, weight, bias, kdrop, p=P_DROP, training=True)
    jax.block_until_ready(out)
    assert out.shape == (N, C_out, H, W)
    assert bool(jnp.all(jnp.isfinite(out)))
    print("KERNEL_OK")
</pallas_src>

<mosaic_0001>
module attributes {stable_mosaic.version = 11 : i64} {
  func.func @kernel(%arg0: memref<256x896xf32, #tpu.memory_space<vmem>>, %arg1: memref<256x896xbf16, #tpu.memory_space<vmem>>, %arg2: memref<21x256xf32, #tpu.memory_space<vmem>>, %arg3: memref<21x1xf32, #tpu.memory_space<vmem>>, %arg4: memref<21x896xf32, #tpu.memory_space<vmem>>) attributes {dimension_semantics = [], scalar_prefetch = 0 : i64, scratch_operands = 0 : i64, tpu.core_type = #tpu.core_type<tc>} {
    %c0 = arith.constant 0 : index
    %c0_0 = arith.constant 0 : index
    %0 = vector.load %arg0[%c0, %c0_0] : memref<256x896xf32, #tpu.memory_space<vmem>>, vector<256x896xf32>
    %c0_1 = arith.constant 0 : index
    %c0_2 = arith.constant 0 : index
    %1 = vector.load %arg1[%c0_1, %c0_2] : memref<256x896xbf16, #tpu.memory_space<vmem>>, vector<256x896xbf16>
    %2 = arith.extf %1 : vector<256x896xbf16> to vector<256x896xf32>
    %3 = arith.mulf %0, %2 : vector<256x896xf32>
    %c0_3 = arith.constant 0 : index
    %c0_4 = arith.constant 0 : index
    %4 = vector.load %arg2[%c0_3, %c0_4] : memref<21x256xf32, #tpu.memory_space<vmem>>, vector<21x256xf32>
    %cst = arith.constant dense<0.000000e+00> : vector<21x896xf32>
    %5 = tpu.matmul %4, %3, %cst {dimension_numbers = #tpu.dot_dimension_numbers<[1], [0], [0], [1], [0, 0, 1, 1], [], []>} : vector<21x256xf32>, vector<256x896xf32>, vector<21x896xf32> -> vector<21x896xf32>
    %cst_5 = arith.constant 1.11111116 : f32
    %6 = vector.broadcast %cst_5 : f32 to vector<21x896xf32>
    %7 = arith.mulf %5, %6 : vector<21x896xf32>
    %c0_6 = arith.constant 0 : index
    %c0_7 = arith.constant 0 : index
    %8 = vector.load %arg3[%c0_6, %c0_7] : memref<21x1xf32, #tpu.memory_space<vmem>>, vector<21x1xf32>
    %9 = vector.broadcast %8 : vector<21x1xf32> to vector<21x896xf32>
    %10 = arith.addf %7, %9 : vector<21x896xf32>
    %c0_8 = arith.constant 0 : index
    %c0_9 = arith.constant 0 : index
    %11 = vector.load %arg4[%c0_8, %c0_9] : memref<21x896xf32, #tpu.memory_space<vmem>>, vector<21x896xf32>
    tpu.vector_store %arg4[%c0_8, %c0_9], %10 {strides = array<i32>} : memref<21x896xf32, #tpu.memory_space<vmem>>, vector<21x896xf32>,
    return
  }
}

</mosaic_0001>

<bundles_post_ra>
// kernel: tpu_custom_call.1
= control target key start
LH: loop header
LB: loop body
LE: loop exit
PB: predicated region body
PF: predicated region fallthrough
CT: control target
= control target key end

     0   :  { %9 = vsyncpa [#allocation3], 0  ;;  %s1985_s0 = inlined_call_operand.hbm [shape: f32[256,896], index: 0, kind: input, shape index: {}]   ;;  %s1986_s1 = inlined_call_operand.hbm [shape: bf16[256,896], index: 1, kind: input, shape index: {}]   ;;  %s1987_s2 = inlined_call_operand.hbm [shape: f32[21,256], index: 2, kind: input, shape index: {}]   ;;  %s1988_s3 = inlined_call_operand.vmem [shape: f32[21,1], index: 3, kind: input, shape index: {}]   ;;  %s1989_s4 = inlined_call_operand.hbm [shape: f32[21,896], index: 4, kind: output, shape index: {}]  }
   0x1   :  { %10 = vsyncpa [#allocation6], 0 }
   0x2   :  { %11 = vsyncpa [#allocation4], 0  ;;  %s1666_s15 = smov [#allocation5]   ;;  %s1572_s19 = scalar_lea.hbm %s1986_s1, 14336 }
   0x3   :  { %s29_s16 = sshll.u32 %s1666_s15, 4  ;;  %p1573_p0 = scmp.ne.s32.totalorder %s1986_s1, %s1572_s19  ;;  %s30_s16 = int_to_ptr.vmem [resolvable:$true] %s29_s16 }
   0x4   :  { %p1576_p1 = scmp.lt.u32.totalorder %s1572_s19, %s1986_s1 }
   0x6   :  { %p1578_p2 = pnand %p1576_p1, %p1573_p0 }
   0x8   :  { %1581 = shalt.err (!%p1578_p2)
}
   0x9   :  { %s1582_s24 = scalar_lea.vmem %s30_s16, 14336  ;;  %p1587_p4 = scmp.lt.s32.totalorder %s30_s16, %s30_s16 }
   0xa   :  { %p1583_p3 = scmp.ne.s32.totalorder %s30_s16, %s1582_s24  ;;  %p1588_p5 = scmp.lt.s32.totalorder %s1582_s24, %s1582_s24 }
   0xc   :  { %p1589_p6 = por %p1588_p5, %p1587_p4 }
   0xe   :  { %p1590_p7 = pnand %p1589_p6, %p1583_p3 }
  0x10   :  { %1593 = shalt.err (!%p1590_p7)
}
  0x11   :  { %s1667_s25 = smov 448   ;;  %s1668_s26 = smov 28  }
  0x12   :  { %35 = dma.hbm_to_vmem [thread:$0]  %s1986_s1, 14336, %s30_s16, [#allocation6], %s1667_s25, %s1667_s25, %s1668_s26  }
  0x13   :  { %s1669_s29 = smov [#allocation2]   ;;  %s1594_s7 = scalar_lea.hbm %s1985_s0, 28672 }
  0x14   :  { %s17_s30 = sshll.u32 %s1669_s29, 4  ;;  %p1595_p8 = scmp.ne.s32.totalorder %s1985_s0, %s1594_s7  ;;  %s18_s30 = int_to_ptr.vmem [resolvable:$true] %s17_s30 }
  0x15   :  { %p1598_p9 = scmp.lt.u32.totalorder %s1594_s7, %s1985_s0 }
  0x17   :  { %p1600_p10 = pnand %p1598_p9, %p1595_p8 }
  0x19   :  { %1603 = shalt.err (!%p1600_p10)
}
  0x1a   :  { %s1604_s12 = scalar_lea.vmem %s18_s30, 28672  ;;  %p1609_p12 = scmp.lt.s32.totalorder %s18_s30, %s18_s30 }
  0x1b   :  { %p1605_p11 = scmp.ne.s32.totalorder %s18_s30, %s1604_s12  ;;  %p1610_p13 = scmp.lt.s32.totalorder %s1604_s12, %s1604_s12 }
  0x1d   :  { %p1611_p0 = por %p1610_p13, %p1609_p12 }
  0x1f   :  { %p1612_p1 = pnand %p1611_p0, %p1605_p11 }
  0x21   :  { %1615 = shalt.err (!%p1612_p1)
}
  0x22   :  { %s1670_s1 = smov 896   ;;  %s1671_s13 = smov 56  }
  0x23   :  { %23 = dma.hbm_to_vmem [thread:$0]  %s1985_s0, 28672, %s18_s30, [#allocation3], %s1670_s1, %s1670_s1, %s1671_s13  }
  0x24   :  { %s1672_s16 = smov [#allocation7]   ;;  %s1616_s20 = scalar_lea.hbm %s1987_s2, 768 }
  0x25   :  { %s41_s17 = sshll.u32 %s1672_s16, 4  ;;  %p1617_p2 = scmp.ne.s32.totalorder %s1987_s2, %s1616_s20  ;;  %s42_s17 = int_to_ptr.vmem [resolvable:$true] %s41_s17 }
  0x26   :  { %p1620_p3 = scmp.lt.u32.totalorder %s1616_s20, %s1987_s2 }
  0x28   :  { %p1622_p4 = pnand %p1620_p3, %p1617_p2 }
  0x2a   :  { %1625 = shalt.err (!%p1622_p4)
}
  0x2b   :  { %s1626_s25 = scalar_lea.vmem %s42_s17, 768  ;;  %p1631_p6 = scmp.lt.s32.totalorder %s42_s17, %s42_s17 }
  0x2c   :  { %p1627_p5 = scmp.ne.s32.totalorder %s42_s17, %s1626_s25  ;;  %p1632_p7 = scmp.lt.s32.totalorder %s1626_s25, %s1626_s25 }
  0x2e   :  { %p1633_p8 = por %p1632_p7, %p1631_p6 }
  0x30   :  { %p1634_p9 = pnand %p1633_p8, %p1627_p5 }
  0x32   :  { %1637 = shalt.err (!%p1634_p9)
}
  0x33   :  { %s1673_s0 = smov 256   ;;  %s1674_s26 = smov 16  }
  0x34   :  { %47 = dma.hbm_to_vmem [thread:$0]  %s1987_s2, 768, %s42_s17, [#allocation6], %s1673_s0, %s1673_s0, %s1674_s26  }
  0x35   :  { %1660 = dma.done.wait [#allocation3], 28672  }
  0x36   :  { %1661 = vsyncadd [#allocation3], 4294938624 }
  0x37   :  { %1662 = dma.done.wait [#allocation6], 15104  }
  0x38   :  { %1663 = vsyncadd [#allocation6], 4294952192  ;;  %v60_v0 = vld [vmem:[#allocation2 + $0x8] sm:$0xff]  ;;  %v67_v1 = vld [vmem:[#allocation2 + $0x40] sm:$0xff] }
  0x39   :  { %v283_v2 = vld [vmem:[#allocation5] sm:$0xff]  ;;  %v66_v6 = vld [vmem:[#allocation2 + $0x38] sm:$0xff]  ;;  %v81_v11 = vld [vmem:[#allocation2 + $0xb0] sm:$0xff] }
  0x3a   :  { %v287_v3 = vld [vmem:[#allocation5 + $0x1c] sm:$0xff]  ;;  %v412_v4 = vunpack.c.h.bf16 %v283_v2  ;;  %v411_v7 = vunpack.c.l.bf16 %v283_v2  ;;  %v295_v15 = vld [vmem:[#allocation5 + $0x54] sm:$0xff]  ;;  %v80_v18 = vld [vmem:[#allocation2 + $0xa8] sm:$0xff] }
  0x3b   :  { %v59_v5 = vld [vmem:[#allocation2] sm:$0xff]  ;;  %v419_v8 = vunpack.c.h.bf16 %v287_v3  ;;  %v418_v9 = vunpack.c.l.bf16 %v287_v3  ;;  %v74_v10 = vld [vmem:[#allocation2 + $0x78] sm:$0xff]  ;;  %v73_v17 = vld [vmem:[#allocation2 + $0x70] sm:$0xff]  ;;  %v433_v22 = vunpack.c.h.bf16 %v295_v15  ;;  %v432_v23 = vunpack.c.l.bf16 %v295_v15 }
  0x3c   :  { %v291_v12 = vld [vmem:[#allocation5 + $0x38] sm:$0xff]  ;;  %v636_v13 = vmul.f32 %v412_v4, %v60_v0  ;;  %v635_v14 = vmul.f32 %v411_v7, %v59_v5  ;;  %v88_v24 = vld [vmem:[#allocation2 + $0xe8] sm:$0xff]  ;;  %v299_v25 = vld [vmem:[#allocation5 + $0x70] sm:$0xff] }
  0x3d   :  { %v426_v16 = vunpack.c.h.bf16 %v291_v12  ;;  %v425_v19 = vunpack.c.l.bf16 %v291_v12  ;;  %v643_v20 = vmul.f32 %v419_v8, %v67_v1  ;;  %v642_v21 = vmul.f32 %v418_v9, %v66_v6  ;;  %v303_v28 = vld [vmem:[#allocation5 + $0x8c] sm:$0xff]  ;;  %v87_v30 = vld [vmem:[#allocation2 + $0xe0] sm:$0xff]  ;;  %v94_v37 = vld [vmem:[#allocation2 + $0x118] sm:$0xff] }
  0x3e   :  { %v440_v29 = vunpack.c.h.bf16 %v299_v25  ;;  %v439_v31 = vunpack.c.l.bf16 %v299_v25  ;;  %v657_v34 = vmul.f32 %v433_v22, %v81_v11  ;;  %v656_v35 = vmul.f32 %v432_v23, %v80_v18  ;;  %v95_v36 = vld [vmem:[#allocation2 + $0x120] sm:$0xff]  ;;  %v307_v38 = vld [vmem:[#allocation5 + $0xa8] sm:$0xff]  ;;  %v102_v43 = vld [vmem:[#allocation2 + $0x158] sm:$0xff] }
  0x3f   :  { %v650_v26 = vmul.f32 %v426_v16, %v74_v10  ;;  %v649_v27 = vmul.f32 %v425_v19, %v73_v17  ;;  %v1334_v32 = vpack.c.bf16 %v643_v20, %v636_v13  ;;  %v1336_v33 = vpack.c.bf16 %v642_v21, %v635_v14  ;;  %v109_v44 = vld [vmem:[#allocation2 + $0x190] sm:$0xff]  ;;  %v311_v45 = vld [vmem:[#allocation5 + $0xc4] sm:$0xff]  ;;  %v319_v59 = vld [vmem:[#allocation5 + $0xfc] sm:$0xff] }
  0x40   :  { %v447_v39 = vunpack.c.h.bf16 %v303_v28  ;;  %v664_v40 = vmul.f32 %v440_v29, %v88_v24  ;;  %v446_v41 = vunpack.c.l.bf16 %v303_v28  ;;  %v1741_v42 = vmul.f32 %v439_v31, %v87_v30  ;;  %v101_v50 = vld [vmem:[#allocation2 + $0x150] sm:$0xff]  ;;  %v108_v51 = vld [vmem:[#allocation2 + $0x188] sm:$0xff]  ;;  %v315_v52 = vld [vmem:[#allocation5 + $0xe0] sm:$0xff] }
  0x41   :  { %1335 = vmatprep.subr.bf16.mxu0 %v1334_v32  ;;  %v1338_v46 = vpack.c.bf16 %v657_v34, %v650_v26  ;;  %v1340_v47 = vpack.c.bf16 %v656_v35, %v649_v27  ;;  %v454_v48 = vunpack.c.h.bf16 %v307_v38  ;;  %v461_v49 = vunpack.c.h.bf16 %v311_v45  ;;  %v116_v57 = vld [vmem:[#allocation2 + $0x1c8] sm:$0xff]  ;;  %v123_v58 = vld [vmem:[#allocation2 + $0x200] sm:$0xff]  ;;  %v323_v0 = vld [vmem:[#allocation5 + $0x118] sm:$0xff] }
  0x42   :  { %1337 = vmatpush1.bf16.msra.mxu0 %v1336_v33  ;;  %v671_v53 = vmul.f32 %v447_v39, %v95_v36  ;;  %v670_v54 = vmul.f32 %v446_v41, %v94_v37  ;;  %v453_v55 = vunpack.c.l.bf16 %v307_v38  ;;  %v460_v56 = vunpack.c.l.bf16 %v311_v45  ;;  %v115_v5 = vld [vmem:[#allocation2 + $0x1c0] sm:$0xff]  ;;  %v122_v6 = vld [vmem:[#allocation2 + $0x1f8] sm:$0xff]  ;;  %v137_v13 = vld [vmem:[#allocation2 + $0x270] sm:$0xff] }
  0x43   :  { %1339 = vmatprep.subr.bf16.mxu0 %v1338_v46  ;;  %v678_v60 = vmul.f32 %v454_v48, %v102_v43  ;;  %v685_v61 = vmul.f32 %v461_v49, %v109_v44  ;;  %v468_v62 = vunpack.c.h.bf16 %v315_v52  ;;  %v475_v63 = vunpack.c.h.bf16 %v319_v59  ;;  %v327_v7 = vld [vmem:[#allocation5 + $0x134] sm:$0xff]  ;;  %v136_v20 = vld [vmem:[#allocation2 + $0x268] sm:$0xff]  ;;  %v151_v30 = vld [vmem:[#allocation2 + $0x2e0] sm:$0xff] }
  0x44   :  { %v1342_v1 = vpack.c.bf16 %v671_v53, %v664_v40  ;;  %v1344_v2 = vpack.c.bf16 %v670_v54, %v1741_v42  ;;  %v1744_v3 = vmul.f32 %v453_v55, %v101_v50  ;;  %v1746_v4 = vmul.f32 %v460_v56, %v108_v51  ;;  %v130_v12 = vld [vmem:[#allocation2 + $0x238] sm:$0xff]  ;;  %v331_v14 = vld [vmem:[#allocation5 + $0x150] sm:$0xff]  ;;  %v144_v26 = vld [vmem:[#allocation2 + $0x2a8] sm:$0xff] }
  0x45   :  { %v1346_v8 = vpack.c.bf16 %v685_v61, %v678_v60  ;;  %v1748_v9 = vmul.f32 %v468_v62, %v116_v57  ;;  %v1750_v10 = vmul.f32 %v475_v63, %v123_v58  ;;  %v467_v11 = vunpack.c.l.bf16 %v315_v52  ;;  %v129_v19 = vld [vmem:[#allocation2 + $0x230] sm:$0xff]  ;;  %v143_v32 = vld [vmem:[#allocation2 + $0x2a0] sm:$0xff]  ;;  %v339_v33 = vld [vmem:[#allocation5 + $0x188] sm:$0xff] }
  0x46   :  { %1341 = vmatpush1.bf16.msra.mxu0 %v1340_v47  ;;  %v1348_v15 = vpack.c.bf16 %v1746_v4, %v1744_v3  ;;  %v474_v16 = vunpack.c.l.bf16 %v319_v59  ;;  %v482_v17 = vunpack.c.h.bf16 %v323_v0  ;;  %v489_v18 = vunpack.c.h.bf16 %v327_v7  ;;  %v335_v21 = vld [vmem:[#allocation5 + $0x16c] sm:$0xff]  ;;  %v150_v37 = vld [vmem:[#allocation2 + $0x2d8] sm:$0xff]  ;;  %v343_v39 = vld [vmem:[#allocation5 + $0x1a4] sm:$0xff] }
  0x47   :  { %1343 = vmatprep.subr.bf16.mxu0 %v1342_v1  ;;  %v1350_v22 = vpack.c.bf16 %v1750_v10, %v1748_v9  ;;  %v1756_v23 = vmul.f32 %v467_v11, %v115_v5  ;;  %v481_v24 = vunpack.c.l.bf16 %v323_v0  ;;  %v488_v25 = vunpack.c.l.bf16 %v327_v7  ;;  %v158_v44 = vld [vmem:[#allocation2 + $0x318] sm:$0xff]  ;;  %v284_v45 = vld [vmem:[#allocation5 + $0x8] sm:$0xff]  ;;  %v165_v50 = vld [vmem:[#allocation2 + $0x350] sm:$0xff] }
  0x48   :  { %v1758_v27 = vmul.f32 %v474_v16, %v122_v6  ;;  %v1760_v28 = vmul.f32 %v482_v17, %v130_v12  ;;  %v1762_v29 = vmul.f32 %v489_v18, %v137_v13  ;;  %v496_v31 = vunpack.c.h.bf16 %v331_v14  ;;  %v288_v46 = vld [vmem:[#allocation5 + $0x24] sm:$0xff]  ;;  %v157_v52 = vld [vmem:[#allocation2 + $0x310] sm:$0xff]  ;;  %v62_v58 = vld [vmem:[#allocation2 + $0x18] sm:$0xff] }
  0x49   :  { %v1764_v34 = vmul.f32 %v481_v24, %v129_v19  ;;  %v1766_v35 = vmul.f32 %v488_v25, %v136_v20  ;;  %v503_v36 = vunpack.c.h.bf16 %v335_v21  ;;  %v495_v38 = vunpack.c.l.bf16 %v331_v14  ;;  %v164_v53 = vld [vmem:[#allocation2 + $0x348] sm:$0xff]  ;;  %v69_v59 = vld [vmem:[#allocation2 + $0x50] sm:$0xff]  ;;  %v347_v0 = vld [vmem:[#allocation5 + $0x1c0] sm:$0xff] }
  0x4a   :  { %1345 = vmatpush1.bf16.msra.mxu0 %v1344_v2  ;;  %v1352_v40 = vpack.c.bf16 %v1758_v27, %v1756_v23  ;;  %v1354_v41 = vpack.c.bf16 %v1762_v29, %v1760_v28  ;;  %v1772_v42 = vmul.f32 %v496_v31, %v144_v26  ;;  %v502_v43 = vunpack.c.l.bf16 %v335_v21  ;;  %v351_v1 = vld [vmem:[#allocation5 + $0x1dc] sm:$0xff]  ;;  %v61_v6 = vld [vmem:[#allocation2 + $0x10] sm:$0xff]  ;;  %v68_v7 = vld [vmem:[#allocation2 + $0x48] sm:$0xff] }
  0x4b   :  { %1347 = vmatprep.subr.bf16.mxu0 %v1346_v8  ;;  %v1356_v47 = vpack.c.bf16 %v1766_v35, %v1764_v34  ;;  %v1776_v48 = vmul.f32 %v503_v36, %v151_v30  ;;  %v1778_v49 = vmul.f32 %v495_v38, %v143_v32  ;;  %v510_v51 = vunpack.c.h.bf16 %v339_v33  ;;  %v172_v12 = vld [vmem:[#allocation2 + $0x388] sm:$0xff]  ;;  %v179_v13 = vld [vmem:[#allocation2 + $0x3c0] sm:$0xff]  ;;  %v178_v24 = vld [vmem:[#allocation2 + $0x3b8] sm:$0xff] }
  0x4c   :  { %v1780_v54 = vmul.f32 %v502_v43, %v150_v37  ;;  %v517_v55 = vunpack.c.h.bf16 %v343_v39  ;;  %v509_v56 = vunpack.c.l.bf16 %v339_v33  ;;  %v516_v57 = vunpack.c.l.bf16 %v343_v39  ;;  %v292_v14 = vld [vmem:[#allocation5 + $0x40] sm:$0xff]  ;;  %v76_v26 = vld [vmem:[#allocation2 + $0x88] sm:$0xff]  ;;  %v355_v33 = vld [vmem:[#allocation5 + $0x1f8] sm:$0xff] }
  0x4d   :  { %v1358_v60 = vpack.c.bf16 %v1776_v48, %v1772_v42  ;;  %v1784_v61 = vmul.f32 %v510_v51, %v158_v44  ;;  %v414_v62 = vunpack.c.h.bf16 %v284_v45  ;;  %v421_v63 = vunpack.c.h.bf16 %v288_v46  ;;  %v171_v19 = vld [vmem:[#allocation2 + $0x380] sm:$0xff]  ;;  %v359_v36 = vld [vmem:[#allocation5 + $0x214] sm:$0xff]  ;;  %v367_v35 = vld [vmem:[#allocation5 + $0x24c] sm:$0xff] }
  0x4e   :  { %1349 = vmatpush1.bf16.msra.mxu0 %v1348_v15  ;;  %v1360_v2 = vpack.c.bf16 %v1780_v54, %v1778_v49  ;;  %v1788_v3 = vmul.f32 %v517_v55, %v165_v50  ;;  %v1790_v4 = vmul.f32 %v509_v56, %v157_v52  ;;  %v1792_v5 = vmul.f32 %v516_v57, %v164_v53  ;;  %v296_v20 = vld [vmem:[#allocation5 + $0x5c] sm:$0xff]  ;;  %v193_v52 = vld [vmem:[#allocation2 + $0x430] sm:$0xff]  ;;  %v104_v49 = vld [vmem:[#allocation2 + $0x168] sm:$0xff] }
  0x4f   :  { %1351 = vmatprep.subr.bf16.mxu0 %v1350_v22  ;;  %v638_v8 = vmul.f32 %v414_v62, %v62_v58  ;;  %v645_v9 = vmul.f32 %v421_v63, %v69_v59  ;;  %v413_v10 = vunpack.c.l.bf16 %v284_v45  ;;  %v420_v11 = vunpack.c.l.bf16 %v288_v46  ;;  %v83_v27 = vld [vmem:[#allocation2 + $0xc0] sm:$0xff]  ;;  %v82_v43 = vld [vmem:[#allocation2 + $0xb8] sm:$0xff]  ;;  %v185_v58 = vld [vmem:[#allocation2 + $0x3f0] sm:$0xff] }
  0x50   :  { %v1362_v15 = vpack.c.bf16 %v1788_v3, %v1784_v61  ;;  %v1364_v16 = vpack.c.bf16 %v1792_v5, %v1790_v4  ;;  %v524_v17 = vunpack.c.h.bf16 %v347_v0  ;;  %v531_v18 = vunpack.c.h.bf16 %v351_v1  ;;  %v75_v32 = vld [vmem:[#allocation2 + $0x80] sm:$0xff]  ;;  %v186_v51 = vld [vmem:[#allocation2 + $0x3f8] sm:$0xff]  ;;  %v192_v59 = vld [vmem:[#allocation2 + $0x428] sm:$0xff] }
  0x51   :  { %v1398_v21 = vpack.c.bf16 %v645_v9, %v638_v8  ;;  %v637_v23 = vmul.f32 %v413_v10, %v61_v6  ;;  %v644_v22 = vmul.f32 %v420_v11, %v68_v7  ;;  %v523_v25 = vunpack.c.l.bf16 %v347_v0  ;;  %v300_v53 = vld [vmem:[#allocation5 + $0x78] sm:$0xff]  ;;  %v97_v11 = vld [vmem:[#allocation2 + $0x130] sm:$0xff]  ;;  %v103_v3 = vld [vmem:[#allocation2 + $0x160] sm:$0xff] }
  0x52   :  { %1353 = vmatpush1.bf16.msra.mxu0 %v1352_v40  ;;  %v1798_v28 = vmul.f32 %v524_v17, %v172_v12  ;;  %v1800_v29 = vmul.f32 %v531_v18, %v179_v13  ;;  %v530_v30 = vunpack.c.l.bf16 %v351_v1  ;;  %v428_v31 = vunpack.c.h.bf16 %v292_v14  ;;  %v304_v62 = vld [vmem:[#allocation5 + $0x94] sm:$0xff] }
  0x53   :  { %1355 = vmatprep.subr.bf16.mxu0 %v1354_v41  ;;  %1399 = vmatprep.subr.bf16.mxu1 %v1398_v21  ;;  %v1400_v37 = vpack.c.bf16 %v644_v22, %v637_v23  ;;  %v1802_v38 = vmul.f32 %v523_v25, %v171_v19  ;;  %v435_v39 = vunpack.c.h.bf16 %v296_v20  ;;  %v427_v44 = vunpack.c.l.bf16 %v292_v14  ;;  %v90_v7 = vld [vmem:[#allocation2 + $0xf8] sm:$0xff]  ;;  %v363_v34 = vld [vmem:[#allocation5 + $0x230] sm:$0xff]  ;;  %v96_v19 = vld [vmem:[#allocation2 + $0x128] sm:$0xff] }
  0x54   :  { %v1366_v40 = vpack.c.bf16 %v1800_v29, %v1798_v28  ;;  %v1806_v45 = vmul.f32 %v530_v30, %v178_v24  ;;  %v652_v46 = vmul.f32 %v428_v31, %v76_v26  ;;  %v434_v50 = vunpack.c.l.bf16 %v296_v20  ;;  %v89_v18 = vld [vmem:[#allocation2 + $0xf0] sm:$0xff]  ;;  %v200_v21 = vld [vmem:[#allocation2 + $0x468] sm:$0xff]  ;;  %v207_v23 = vld [vmem:[#allocation2 + $0x4a0] sm:$0xff] }
  0x55   :  { %1401 = vmatpush1.bf16.msra.mxu1 %v1400_v37  ;;  %v659_v55 = vmul.f32 %v435_v39, %v83_v27  ;;  %v651_v41 = vmul.f32 %v427_v44, %v75_v32  ;;  %v538_v56 = vunpack.c.h.bf16 %v355_v33  ;;  %v545_v57 = vunpack.c.h.bf16 %v359_v36  ;;  %v308_v22 = vld [vmem:[#allocation5 + $0xb0] sm:$0xff]  ;;  %v199_v30 = vld [vmem:[#allocation2 + $0x460] sm:$0xff]  ;;  %v206_v31 = vld [vmem:[#allocation2 + $0x498] sm:$0xff] }
  0x56   :  { %1357 = vmatpush1.bf16.msra.mxu0 %v1356_v47  ;;  %v1368_v63 = vpack.c.bf16 %v1806_v45, %v1802_v38  ;;  %v658_v0 = vmul.f32 %v434_v50, %v82_v43  ;;  %v537_v1 = vunpack.c.l.bf16 %v355_v33  ;;  %v544_v6 = vunpack.c.l.bf16 %v359_v36  ;;  %v312_v32 = vld [vmem:[#allocation5 + $0xcc] sm:$0xff]  ;;  %v111_v44 = vld [vmem:[#allocation2 + $0x1a0] sm:$0xff] }
  0x57   :  { %1359 = vmatprep.subr.bf16.mxu0 %v1358_v60  ;;  %v1402_v8 = vpack.c.bf16 %v659_v55, %v652_v46  ;;  %v1816_v9 = vmul.f32 %v538_v56, %v186_v51  ;;  %v1818_v10 = vmul.f32 %v545_v57, %v193_v52  ;;  %v442_v12 = vunpack.c.h.bf16 %v300_v53  ;;  %v371_v50 = vld [vmem:[#allocation5 + $0x268] sm:$0xff]  ;;  %v125_v29 = vld [vmem:[#allocation2 + $0x210] sm:$0xff] }
  0x58   :  { %v1404_v47 = vpack.c.bf16 %v658_v0, %v651_v41  ;;  %v1820_v13 = vmul.f32 %v537_v1, %v185_v58  ;;  %v1822_v14 = vmul.f32 %v544_v6, %v192_v59  ;;  %v449_v17 = vunpack.c.h.bf16 %v304_v62  ;;  %v375_v51 = vld [vmem:[#allocation5 + $0x284] sm:$0xff]  ;;  %v214_v59 = vld [vmem:[#allocation2 + $0x4d8] sm:$0xff]  ;;  %v213_v6 = vld [vmem:[#allocation2 + $0x4d0] sm:$0xff] }
  0x59   :  { %1403 = vmatprep.subr.bf16.mxu1 %v1402_v8  ;;  %v1370_v42 = vpack.c.bf16 %v1818_v10, %v1816_v9  ;;  %v666_v48 = vmul.f32 %v442_v12, %v90_v7  ;;  %v441_v60 = vunpack.c.l.bf16 %v300_v53  ;;  %v448_v20 = vunpack.c.l.bf16 %v304_v62  ;;  %v221_v62 = vld [vmem:[#allocation2 + $0x510] sm:$0xff]  ;;  %v316_v0 = vld [vmem:[#allocation5 + $0xe8] sm:$0xff]  ;;  %v234_v9 = vld [vmem:[#allocation2 + $0x578] sm:$0xff] }
  0x5a   :  { %1361 = vmatpush1.bf16.msra.mxu0 %v1360_v2  ;;  %1405 = vmatpush1.bf16.msra.mxu1 %v1404_v47  ;;  %v1372_v24 = vpack.c.bf16 %v1822_v14, %v1820_v13  ;;  %v673_v25 = vmul.f32 %v449_v17, %v97_v11  ;;  %v552_v26 = vunpack.c.h.bf16 %v363_v34  ;;  %v559_v27 = vunpack.c.h.bf16 %v367_v35  ;;  %v220_v7 = vld [vmem:[#allocation2 + $0x508] sm:$0xff]  ;;  %v118_v47 = vld [vmem:[#allocation2 + $0x1d8] sm:$0xff]  ;;  %v131_v14 = vld [vmem:[#allocation2 + $0x240] sm:$0xff] }
  0x5b   :  { %1363 = vmatprep.subr.bf16.mxu0 %v1362_v15  ;;  %v665_v33 = vmul.f32 %v441_v60, %v89_v18  ;;  %v672_v36 = vmul.f32 %v448_v20, %v96_v19  ;;  %v551_v37 = vunpack.c.l.bf16 %v363_v34  ;;  %v558_v39 = vunpack.c.l.bf16 %v367_v35  ;;  %v110_v15 = vld [vmem:[#allocation2 + $0x198] sm:$0xff]  ;;  %v320_v8 = vld [vmem:[#allocation5 + $0x104] sm:$0xff] }
  0x5c   :  { %v1406_v54 = vpack.c.bf16 %v673_v25, %v666_v48  ;;  %v1834_v2 = vmul.f32 %v552_v26, %v200_v21  ;;  %v1836_v43 = vmul.f32 %v559_v27, %v207_v23  ;;  %v456_v46 = vunpack.c.h.bf16 %v308_v22  ;;  %v379_v19 = vld [vmem:[#allocation5 + $0x2a0] sm:$0xff]  ;;  %v124_v25 = vld [vmem:[#allocation2 + $0x208] sm:$0xff] }
  0x5d   :  { %v1408_v52 = vpack.c.bf16 %v672_v36, %v665_v33  ;;  %v1838_v53 = vmul.f32 %v551_v37, %v199_v30  ;;  %v1840_v55 = vmul.f32 %v558_v39, %v206_v31  ;;  %v463_v61 = vunpack.c.h.bf16 %v312_v32  ;;  %v383_v48 = vld [vmem:[#allocation5 + $0x2bc] sm:$0xff]  ;;  %v228_v45 = vld [vmem:[#allocation2 + $0x548] sm:$0xff] }
  0x5e   :  { %1365 = vmatpush1.bf16.msra.mxu0 %v1364_v16  ;;  %1407 = vmatprep.subr.bf16.mxu1 %v1406_v54  ;;  %v1374_v41 = vpack.c.bf16 %v1836_v43, %v1834_v2  ;;  %v680_v56 = vmul.f32 %v456_v46, %v104_v49  ;;  %v455_v57 = vunpack.c.l.bf16 %v308_v22  ;;  %v462_v58 = vunpack.c.l.bf16 %v312_v32  ;;  %v117_v22 = vld [vmem:[#allocation2 + $0x1d0] sm:$0xff]  ;;  %v324_v31 = vld [vmem:[#allocation5 + $0x120] sm:$0xff]  ;;  %v132_v46 = vld [vmem:[#allocation2 + $0x248] sm:$0xff] }
  0x5f   :  { %1367 = vmatprep.subr.bf16.mxu0 %v1366_v40  ;;  %1409 = vmatpush1.bf16.msra.mxu1 %v1408_v52  ;;  %v1376_v1 = vpack.c.bf16 %v1840_v55, %v1838_v53  ;;  %v687_v4 = vmul.f32 %v463_v61, %v111_v44  ;;  %v566_v5 = vunpack.c.h.bf16 %v371_v50  ;;  %v573_v16 = vunpack.c.h.bf16 %v375_v51  ;;  %v227_v39 = vld [vmem:[#allocation2 + $0x540] sm:$0xff] }
  0x60   :  { %v679_v11 = vmul.f32 %v455_v57, %v103_v3  ;;  %v686_v12 = vmul.f32 %v462_v58, %v110_v15  ;;  %v565_v34 = vunpack.c.l.bf16 %v371_v50  ;;  %v572_v35 = vunpack.c.l.bf16 %v375_v51  ;;  %v328_v10 = vld [vmem:[#allocation5 + $0x13c] sm:$0xff] }
  0x61   :  { %v1410_v17 = vpack.c.bf16 %v687_v4, %v680_v56  ;;  %v1852_v18 = vmul.f32 %v566_v5, %v214_v59  ;;  %v1854_v28 = vmul.f32 %v573_v16, %v221_v62  ;;  %v470_v40 = vunpack.c.h.bf16 %v316_v0  ;;  %v139_v61 = vld [vmem:[#allocation2 + $0x280] sm:$0xff]  ;;  %v387_v15 = vld [vmem:[#allocation5 + $0x2d8] sm:$0xff] }
  0x62   :  { %1369 = vmatpush1.bf16.msra.mxu0 %v1368_v63  ;;  %v1412_v60 = vpack.c.bf16 %v686_v12, %v679_v11  ;;  %v1859_v20 = vmul.f32 %v565_v34, %v213_v6  ;;  %v1861_v21 = vmul.f32 %v572_v35, %v220_v7  ;;  %v477_v23 = vunpack.c.h.bf16 %v320_v8  ;;  %v235_v63 = vld [vmem:[#allocation2 + $0x580] sm:$0xff]  ;;  %v391_v56 = vld [vmem:[#allocation5 + $0x2f4] sm:$0xff]  ;;  %v248_v12 = vld [vmem:[#allocation2 + $0x5e8] sm:$0xff] }
  0x63   :  { %1371 = vmatprep.subr.bf16.mxu0 %v1370_v42  ;;  %1411 = vmatprep.subr.bf16.mxu1 %v1410_v17  ;;  %v1378_v26 = vpack.c.bf16 %v1854_v28, %v1852_v18  ;;  %v694_v27 = vmul.f32 %v470_v40, %v118_v47  ;;  %v469_v30 = vunpack.c.l.bf16 %v316_v0  ;;  %v476_v38 = vunpack.c.l.bf16 %v320_v8  ;;  %v242_v16 = vld [vmem:[#allocation2 + $0x5b8] sm:$0xff]  ;;  %v249_v6 = vld [vmem:[#allocation2 + $0x5f0] sm:$0xff] }
  0x64   :  { %1413 = vmatpush1.bf16.msra.mxu1 %v1412_v60  ;;  %v1380_v32 = vpack.c.bf16 %v1861_v21, %v1859_v20  ;;  %v701_v33 = vmul.f32 %v477_v23, %v125_v29  ;;  %v580_v36 = vunpack.c.h.bf16 %v379_v19  ;;  %v587_v37 = vunpack.c.h.bf16 %v383_v48  ;;  %v332_v7 = vld [vmem:[#allocation5 + $0x158] sm:$0xff]  ;;  %v241_v11 = vld [vmem:[#allocation2 + $0x5b0] sm:$0xff]  ;;  %v167_v21 = vld [vmem:[#allocation2 + $0x360] sm:$0xff] }
  0x65   :  { %v693_v42 = vmul.f32 %v469_v30, %v117_v22  ;;  %v700_v49 = vmul.f32 %v476_v38, %v124_v25  ;;  %v579_v54 = vunpack.c.l.bf16 %v379_v19  ;;  %v586_v44 = vunpack.c.l.bf16 %v383_v48  ;;  %v336_v34 = vld [vmem:[#allocation5 + $0x174] sm:$0xff]  ;;  %v399_v22 = vld [vmem:[#allocation5 + $0x32c] sm:$0xff] }
  0x66   :  { %1373 = vmatpush1.bf16.msra.mxu0 %v1372_v24  ;;  %v1414_v50 = vpack.c.bf16 %v701_v33, %v694_v27  ;;  %v1873_v51 = vmul.f32 %v580_v36, %v228_v45  ;;  %v1875_v52 = vmul.f32 %v587_v37, %v235_v63  ;;  %v484_v3 = vunpack.c.h.bf16 %v324_v31  ;;  %v138_v24 = vld [vmem:[#allocation2 + $0x278] sm:$0xff]  ;;  %v153_v29 = vld [vmem:[#allocation2 + $0x2f0] sm:$0xff]  ;;  %v1891_v25 = vld [vmem:[#allocation7 + $0x8] sm:$0xff] }
  0x67   :  { %1375 = vmatprep.subr.bf16.mxu0 %v1374_v41  ;;  %v1416_v57 = vpack.c.bf16 %v700_v49, %v693_v42  ;;  %v1880_v58 = vmul.f32 %v579_v54, %v227_v39  ;;  %v1882_v59 = vmul.f32 %v586_v44, %v234_v9  ;;  %v491_v13 = vunpack.c.h.bf16 %v328_v10  ;;  %v146_v28 = vld [vmem:[#allocation2 + $0x2b8] sm:$0xff]  ;;  %v395_v23 = vld [vmem:[#allocation5 + $0x310] sm:$0xff]  ;;  %v152_v38 = vld [vmem:[#allocation2 + $0x2e8] sm:$0xff]  ;;  %929 = vmatprep.mubr.f32.mxu0 %v1891_v25 }
  0x68   :  { %1415 = vmatprep.subr.bf16.mxu1 %v1414_v50  ;;  %v1382_v62 = vpack.c.bf16 %v1875_v52, %v1873_v51  ;;  %v708_v0 = vmul.f32 %v484_v3, %v132_v46  ;;  %v483_v4 = vunpack.c.l.bf16 %v324_v31  ;;  %v490_v5 = vunpack.c.l.bf16 %v328_v10  ;;  %1012 = vmatprep.mubr.f32.mxu1 %v1891_v25  ;;  %v256_v33 = vld [vmem:[#allocation2 + $0x628] sm:$0xff]  ;;  %v263_v36 = vld [vmem:[#allocation2 + $0x660] sm:$0xff]  ;;  %v340_v37 = vld [vmem:[#allocation5 + $0x190] sm:$0xff] }
  0x69   :  { %1417 = vmatpush1.bf16.msra.mxu1 %v1416_v57  ;;  %v1384_v2 = vpack.c.bf16 %v1882_v59, %v1880_v58  ;;  %v715_v43 = vmul.f32 %v491_v13, %v139_v61  ;;  %v594_v41 = vunpack.c.h.bf16 %v387_v15  ;;  %v601_v8 = vunpack.c.h.bf16 %v391_v56  ;;  %v255_v49 = vld [vmem:[#allocation2 + $0x620] sm:$0xff]  ;;  %v262_v54 = vld [vmem:[#allocation2 + $0x658] sm:$0xff]  ;;  %v344_v44 = vld [vmem:[#allocation5 + $0x1ac] sm:$0xff] }
  0x6a   :  { %1377 = vmatpush1.bf16.msra.mxu0 %v1376_v1  ;;  %v707_v35 = vmul.f32 %v483_v4, %v131_v14  ;;  %v714_v47 = vmul.f32 %v490_v5, %v138_v24  ;;  %v593_v17 = vunpack.c.l.bf16 %v387_v15  ;;  %v600_v18 = vunpack.c.l.bf16 %v391_v56  ;;  %v145_v1 = vld [vmem:[#allocation2 + $0x2b0] sm:$0xff]  ;;  %v160_v61 = vld [vmem:[#allocation2 + $0x328] sm:$0xff]  ;;  %v159_v4 = vld [vmem:[#allocation2 + $0x320] sm:$0xff] }
  0x6b   :  { %1379 = vmatprep.subr.bf16.mxu0 %v1378_v26  ;;  %v1418_v40 = vpack.c.bf16 %v715_v43, %v708_v0  ;;  %v818_v19 = vmul.f32 %v594_v41, %v242_v16  ;;  %v825_v48 = vmul.f32 %v601_v8, %v249_v6  ;;  %v498_v60 = vunpack.c.h.bf16 %v332_v7  ;;  %v403_v56 = vld [vmem:[#allocation5 + $0x348] sm:$0xff]  ;;  %v270_v43 = vld [vmem:[#allocation2 + $0x698] sm:$0xff]  ;;  %v277_v41 = vld [vmem:[#allocation2 + $0x6d0] sm:$0xff] }
  0x6c   :  { %v1420_v27 = vpack.c.bf16 %v714_v47, %v707_v35  ;;  %v1893_v30 = vmul.f32 %v593_v17, %v241_v11  ;;  %v1895_v53 = vmul.f32 %v600_v18, %v248_v12  ;;  %v505_v55 = vunpack.c.h.bf16 %v336_v34  ;;  %v407_v57 = vld [vmem:[#allocation5 + $0x364] sm:$0xff]  ;;  %v269_v47 = vld [vmem:[#allocation2 + $0x690] sm:$0xff] }
  0x6d   :  { %1419 = vmatprep.subr.bf16.mxu1 %v1418_v40  ;;  %v1386_v26 = vpack.c.bf16 %v825_v48, %v818_v19  ;;  %v722_v45 = vmul.f32 %v498_v60, %v146_v28  ;;  %v497_v63 = vunpack.c.l.bf16 %v332_v7  ;;  %v504_v31 = vunpack.c.l.bf16 %v336_v34  ;;  %v348_v8 = vld [vmem:[#allocation5 + $0x1c8] sm:$0xff]  ;;  %v181_v60 = vld [vmem:[#allocation2 + $0x3d0] sm:$0xff] }
  0x6e   :  { %1381 = vmatpush1.bf16.msra.mxu0 %v1380_v32  ;;  %1421 = vmatpush1.bf16.msra.mxu1 %v1420_v27  ;;  %v1388_v39 = vpack.c.bf16 %v1895_v53, %v1893_v30  ;;  %v729_v9 = vmul.f32 %v505_v55, %v153_v29  ;;  %v608_v10 = vunpack.c.h.bf16 %v395_v23  ;;  %v615_v42 = vunpack.c.h.bf16 %v399_v22  ;;  %v276_v17 = vld [vmem:[#allocation2 + $0x6c8] sm:$0xff]  ;;  %v174_v29 = vld [vmem:[#allocation2 + $0x398] sm:$0xff] }
  0x6f   :  { %1383 = vmatprep.subr.bf16.mxu0 %v1382_v62  ;;  %v721_v46 = vmul.f32 %v497_v63, %v145_v1  ;;  %v728_v50 = vmul.f32 %v504_v31, %v152_v38  ;;  %v607_v51 = vunpack.c.l.bf16 %v395_v23  ;;  %v614_v52 = vunpack.c.l.bf16 %v399_v22  ;;  %v166_v62 = vld [vmem:[#allocation2 + $0x358] sm:$0xff]  ;;  %v352_v58 = vld [vmem:[#allocation5 + $0x1e4] sm:$0xff]  ;;  %v285_v22 = vld [vmem:[#allocation5 + $0x10] sm:$0xff] }
  0x70   :  { %v1422_v3 = vpack.c.bf16 %v729_v9, %v722_v45  ;;  %v832_v15 = vmul.f32 %v608_v10, %v256_v33  ;;  %v839_v20 = vmul.f32 %v615_v42, %v263_v36  ;;  %v512_v32 = vunpack.c.h.bf16 %v340_v37  ;;  %v173_v1 = vld [vmem:[#allocation2 + $0x390] sm:$0xff]  ;;  %v180_v38 = vld [vmem:[#allocation2 + $0x3c8] sm:$0xff]  ;;  %v360_v9 = vld [vmem:[#allocation5 + $0x21c] sm:$0xff] }
  0x71   :  { %v1424_v13 = vpack.c.bf16 %v728_v50, %v721_v46  ;;  %v1904_v14 = vmul.f32 %v607_v51, %v255_v49  ;;  %v1906_v24 = vmul.f32 %v614_v52, %v262_v54  ;;  %v519_v0 = vunpack.c.h.bf16 %v344_v44  ;;  %v64_v36 = vld [vmem:[#allocation2 + $0x28] sm:$0xff]  ;;  %v70_v46 = vld [vmem:[#allocation2 + $0x58] sm:$0xff] }
  0x72   :  { %1385 = vmatpush1.bf16.msra.mxu0 %v1384_v2  ;;  %1423 = vmatprep.subr.bf16.mxu1 %v1422_v3  ;;  %v1390_v5 = vpack.c.bf16 %v839_v20, %v832_v15  ;;  %v736_v16 = vmul.f32 %v512_v32, %v160_v61  ;;  %v511_v6 = vunpack.c.l.bf16 %v340_v37  ;;  %v518_v7 = vunpack.c.l.bf16 %v344_v44  ;;  %v356_v37 = vld [vmem:[#allocation5 + $0x200] sm:$0xff]  ;;  %v188_v3 = vld [vmem:[#allocation2 + $0x408] sm:$0xff] }
  0x73   :  { %1387 = vmatprep.subr.bf16.mxu0 %v1386_v26  ;;  %1425 = vmatpush1.bf16.msra.mxu1 %v1424_v13  ;;  %v1392_v11 = vpack.c.bf16 %v1906_v24, %v1904_v14  ;;  %v743_v12 = vmul.f32 %v519_v0, %v167_v21  ;;  %v622_v34 = vunpack.c.h.bf16 %v403_v56  ;;  %v629_v35 = vunpack.c.h.bf16 %v407_v57  ;;  %v289_v26 = vld [vmem:[#allocation5 + $0x2c] sm:$0xff]  ;;  %v63_v44 = vld [vmem:[#allocation2 + $0x20] sm:$0xff] }
  0x74   :  { %v735_v59 = vmul.f32 %v511_v6, %v159_v4  ;;  %v742_v2 = vmul.f32 %v518_v7, %v166_v62  ;;  %v621_v18 = vunpack.c.l.bf16 %v403_v56  ;;  %v628_v28 = vunpack.c.l.bf16 %v407_v57  ;;  %v195_v15 = vld [vmem:[#allocation2 + $0x440] sm:$0xff]  ;;  %v293_v57 = vld [vmem:[#allocation5 + $0x48] sm:$0xff]  ;;  %v194_v62 = vld [vmem:[#allocation2 + $0x438] sm:$0xff] }
  0x75   :  { %v1426_v40 = vpack.c.bf16 %v743_v12, %v736_v16  ;;  %v846_v19 = vmul.f32 %v622_v34, %v270_v43  ;;  %v853_v48 = vmul.f32 %v629_v35, %v277_v41  ;;  %v526_v23 = vunpack.c.h.bf16 %v348_v8  ;;  %v187_v4 = vld [vmem:[#allocation2 + $0x400] sm:$0xff]  ;;  %v78_v41 = vld [vmem:[#allocation2 + $0x98] sm:$0xff] }
  0x76   :  { %1389 = vmatpush1.bf16.msra.mxu0 %v1388_v39  ;;  %v1428_v27 = vpack.c.bf16 %v742_v2, %v735_v59  ;;  %v845_v30 = vmul.f32 %v621_v18, %v269_v47  ;;  %v852_v53 = vmul.f32 %v628_v28, %v276_v17  ;;  %v533_v55 = vunpack.c.h.bf16 %v352_v58  ;;  %v71_v39 = vld [vmem:[#allocation2 + $0x60] sm:$0xff]  ;;  %v84_v59 = vld [vmem:[#allocation2 + $0xc8] sm:$0xff] }
  0x77   :  { %1391 = vmatprep.subr.bf16.mxu0 %v1390_v5  ;;  %1427 = vmatprep.subr.bf16.mxu1 %v1426_v40  ;;  %v1394_v45 = vpack.c.bf16 %v853_v48, %v846_v19  ;;  %v750_v63 = vmul.f32 %v526_v23, %v174_v29  ;;  %v525_v31 = vunpack.c.l.bf16 %v348_v8  ;;  %v532_v33 = vunpack.c.l.bf16 %v352_v58  ;;  %v297_v5 = vld [vmem:[#allocation5 + $0x64] sm:$0xff]  ;;  %v364_v8 = vld [vmem:[#allocation5 + $0x238] sm:$0xff]  ;;  %v77_v58 = vld [vmem:[#allocation2 + $0x90] sm:$0xff] }
  0x78   :  { %1429 = vmatpush1.bf16.msra.mxu1 %v1428_v27  ;;  %v1396_v10 = vpack.c.bf16 %v852_v53, %v845_v30  ;;  %v757_v42 = vmul.f32 %v533_v55, %v181_v60  ;;  %v415_v49 = vunpack.c.l.bf16 %v285_v22  ;;  %v416_v54 = vunpack.c.h.bf16 %v285_v22  ;;  %v1913_v12 = vld [vmem:[#allocation7] sm:$0xff]  ;;  %v85_v29 = vld [vmem:[#allocation2 + $0xd0] sm:$0xff]  ;;  %v202_v19 = vld [vmem:[#allocation2 + $0x478] sm:$0xff] }
  0x79   :  { %v749_v50 = vmul.f32 %v525_v31, %v173_v1  ;;  %v756_v51 = vmul.f32 %v532_v33, %v180_v38  ;;  %v422_v52 = vunpack.c.l.bf16 %v289_v26  ;;  %v423_v61 = vunpack.c.h.bf16 %v289_v26  ;;  %v209_v48 = vld [vmem:[#allocation2 + $0x4b0] sm:$0xff]  ;;  %v301_v53 = vld [vmem:[#allocation5 + $0x80] sm:$0xff]  ;;  %v208_v26 = vld [vmem:[#allocation2 + $0x4a8] sm:$0xff] }
  0x7a   :  { %1393 = vmatpush1.bf16.msra.mxu0 %v1392_v11  ;;  %v1430_v20 = vpack.c.bf16 %v757_v42, %v750_v63  ;;  %v640_v21 = vmul.f32 %v416_v54, %v64_v36  ;;  %v540_v32 = vunpack.c.h.bf16 %v356_v37  ;;  %v547_v56 = vunpack.c.h.bf16 %v360_v9  ;;  %v368_v11 = vld [vmem:[#allocation5 + $0x254] sm:$0xff]  ;;  %v305_v63 = vld [vmem:[#allocation5 + $0x9c] sm:$0xff]  ;;  %v376_v42 = vld [vmem:[#allocation5 + $0x28c] sm:$0xff] }
  0x7b   :  { %1395 = vmatprep.subr.bf16.mxu0 %v1394_v45  ;;  %v1432_v13 = vpack.c.bf16 %v756_v51, %v749_v50  ;;  %v647_v14 = vmul.f32 %v423_v61, %v71_v39  ;;  %v639_v24 = vmul.f32 %v415_v49, %v63_v44  ;;  %v646_v0 = vmul.f32 %v422_v52, %v70_v46  ;;  %v201_v30 = vld [vmem:[#allocation2 + $0x470] sm:$0xff]  ;;  %v91_v46 = vld [vmem:[#allocation2 + $0x100] sm:$0xff]  ;;  %v98_v50 = vld [vmem:[#allocation2 + $0x138] sm:$0xff] }
  0x7c   :  { %1431 = vmatprep.subr.bf16.mxu1 %v1430_v20  ;;  %v764_v16 = vmul.f32 %v540_v32, %v188_v3  ;;  %v771_v6 = vmul.f32 %v547_v56, %v195_v15  ;;  %v539_v7 = vunpack.c.l.bf16 %v356_v37  ;;  %v546_v43 = vunpack.c.l.bf16 %v360_v9  ;;  %v92_v9 = vld [vmem:[#allocation2 + $0x108] sm:$0xff]  ;;  %v99_v3 = vld [vmem:[#allocation2 + $0x140] sm:$0xff] }
  0x7d   :  { %1433 = vmatpush1.bf16.msra.mxu1 %v1432_v13  ;;  %v1462_v34 = vpack.c.bf16 %v647_v14, %v640_v21  ;;  %v1464_v35 = vpack.c.bf16 %v646_v0, %v639_v24  ;;  %v429_v47 = vunpack.c.l.bf16 %v293_v57  ;;  %v430_v17 = vunpack.c.h.bf16 %v293_v57  ;;  %v216_v20 = vld [vmem:[#allocation2 + $0x4e8] sm:$0xff]  ;;  %v223_v21 = vld [vmem:[#allocation2 + $0x520] sm:$0xff]  ;;  %v309_v24 = vld [vmem:[#allocation5 + $0xb8] sm:$0xff] }
  0x7e   :  { %1397 = vmatpush1.bf16.msra.mxu0 %v1396_v10  ;;  %v1434_v2 = vpack.c.bf16 %v771_v6, %v764_v16  ;;  %v763_v18 = vmul.f32 %v539_v7, %v187_v4  ;;  %v770_v28 = vmul.f32 %v546_v43, %v194_v62  ;;  %v436_v40 = vunpack.c.l.bf16 %v297_v5  ;;  %v372_v10 = vld [vmem:[#allocation5 + $0x270] sm:$0xff]  ;;  %v215_v14 = vld [vmem:[#allocation2 + $0x4e0] sm:$0xff] }
  0x7f   :  { %1463 = vmatprep.subr.bf16.mxu0 %v1462_v34  ;;  %v437_v60 = vunpack.c.h.bf16 %v297_v5  ;;  %v654_v23 = vmul.f32 %v430_v17, %v78_v41  ;;  %v554_v22 = vunpack.c.h.bf16 %v364_v8  ;;  %v561_v27 = vunpack.c.h.bf16 %v368_v11  ;;  %v222_v5 = vld [vmem:[#allocation2 + $0x518] sm:$0xff]  ;;  %v380_v34 = vld [vmem:[#allocation5 + $0x2a8] sm:$0xff] }
  0x80   :  { %1435 = vmatprep.subr.bf16.mxu1 %v1434_v2  ;;  %v1436_v55 = vpack.c.bf16 %v770_v28, %v763_v18  ;;  %v653_v1 = vmul.f32 %v429_v47, %v77_v58  ;;  %v660_v38 = vmul.f32 %v436_v40, %v84_v59  ;;  %v553_v45 = vunpack.c.l.bf16 %v364_v8  ;;  %v313_v6 = vld [vmem:[#allocation5 + $0xd4] sm:$0xff]  ;;  %v112_v18 = vld [vmem:[#allocation2 + $0x1a8] sm:$0xff] }
  0x81   :  { %930 = vmatmul.mubr.f32.vlgmr.msra.gmra.mrb[0].mxu0 %v1913_v12  ;;  %v661_v31 = vmul.f32 %v437_v60, %v85_v29  ;;  %v778_v33 = vmul.f32 %v554_v22, %v202_v19  ;;  %v785_v36 = vmul.f32 %v561_v27, %v209_v48  ;;  %v560_v37 = vunpack.c.l.bf16 %v368_v11  ;;  %v106_v11 = vld [vmem:[#allocation2 + $0x178] sm:$0xff]  ;;  %v105_v2 = vld [vmem:[#allocation2 + $0x170] sm:$0xff] }
  0x82   :  { %1465 = vmatpush1.bf16.msra.mxu0 %v1464_v35  ;;  %1437 = vmatpush1.bf16.msra.mxu1 %v1436_v55  ;;  %v1468_v39 = vpack.c.bf16 %v660_v38, %v653_v1  ;;  %v777_v49 = vmul.f32 %v553_v45, %v201_v30  ;;  %v443_v54 = vunpack.c.l.bf16 %v301_v53  ;;  %v444_v44 = vunpack.c.h.bf16 %v301_v53  ;;  %v384_v35 = vld [vmem:[#allocation5 + $0x2c4] sm:$0xff]  ;;  %v113_v19 = vld [vmem:[#allocation2 + $0x1b0] sm:$0xff]  ;;  %v230_v60 = vld [vmem:[#allocation2 + $0x558] sm:$0xff] }
  0x83   :  { %v1466_v51 = vpack.c.bf16 %v661_v31, %v654_v23  ;;  %v1438_v52 = vpack.c.bf16 %v785_v36, %v778_v33  ;;  %v784_v61 = vmul.f32 %v560_v37, %v208_v26  ;;  %v450_v15 = vunpack.c.l.bf16 %v305_v63  ;;  %v237_v23 = vld [vmem:[#allocation2 + $0x590] sm:$0xff] }
  0x84   :  { %v451_v32 = vunpack.c.h.bf16 %v305_v63  ;;  %v668_v56 = vmul.f32 %v444_v44, %v92_v9  ;;  %v568_v57 = vunpack.c.h.bf16 %v372_v10  ;;  %v575_v13 = vunpack.c.h.bf16 %v376_v42  ;;  %v229_v55 = vld [vmem:[#allocation2 + $0x550] sm:$0xff]  ;;  %v236_v63 = vld [vmem:[#allocation2 + $0x588] sm:$0xff] }
  0x85   :  { %1467 = vmatprep.subr.bf16.mxu0 %v1466_v51  ;;  %1439 = vmatprep.subr.bf16.mxu1 %v1438_v52  ;;  %v1440_v0 = vpack.c.bf16 %v784_v61, %v777_v49  ;;  %v667_v4 = vmul.f32 %v443_v54, %v91_v46  ;;  %v674_v62 = vmul.f32 %v450_v15, %v98_v50  ;;  %v567_v16 = vunpack.c.l.bf16 %v372_v10  ;;  %v317_v1 = vld [vmem:[#allocation5 + $0xf0] sm:$0xff]  ;;  %v392_v49 = vld [vmem:[#allocation5 + $0x2fc] sm:$0xff] }
  0x86   :  { %1469 = vmatpush1.bf16.msra.mxu0 %v1468_v39  ;;  %v675_v7 = vmul.f32 %v451_v32, %v99_v3  ;;  %v792_v43 = vmul.f32 %v568_v57, %v216_v20  ;;  %v799_v41 = vmul.f32 %v575_v13, %v223_v21  ;;  %v574_v8 = vunpack.c.l.bf16 %v376_v42  ;;  %v321_v33 = vld [vmem:[#allocation5 + $0x10c] sm:$0xff]  ;;  %v388_v39 = vld [vmem:[#allocation5 + $0x2e0] sm:$0xff]  ;;  %v126_v52 = vld [vmem:[#allocation2 + $0x218] sm:$0xff] }
  0x87   :  { %1441 = vmatpush1.bf16.msra.mxu1 %v1440_v0  ;;  %v1472_v47 = vpack.c.bf16 %v674_v62, %v667_v4  ;;  %v791_v17 = vmul.f32 %v567_v16, %v215_v14  ;;  %v457_v58 = vunpack.c.l.bf16 %v309_v24  ;;  %v458_v59 = vunpack.c.h.bf16 %v309_v24  ;;  %v120_v42 = vld [vmem:[#allocation2 + $0x1e8] sm:$0xff]  ;;  %v119_v51 = vld [vmem:[#allocation2 + $0x1e0] sm:$0xff] }
  0x88   :  { %v1470_v28 = vpack.c.bf16 %v675_v7, %v668_v56  ;;  %v1442_v29 = vpack.c.bf16 %v799_v41, %v792_v43  ;;  %v798_v40 = vmul.f32 %v574_v8, %v222_v5  ;;  %v464_v48 = vunpack.c.l.bf16 %v313_v6  ;;  %v127_v20 = vld [vmem:[#allocation2 + $0x220] sm:$0xff]  ;;  %v244_v32 = vld [vmem:[#allocation2 + $0x5c8] sm:$0xff] }
  0x89   :  { %v465_v22 = vunpack.c.h.bf16 %v313_v6  ;;  %v682_v27 = vmul.f32 %v458_v59, %v106_v11  ;;  %v582_v30 = vunpack.c.h.bf16 %v380_v34  ;;  %v589_v53 = vunpack.c.h.bf16 %v384_v35  ;;  %v251_v56 = vld [vmem:[#allocation2 + $0x600] sm:$0xff]  ;;  %v325_v4 = vld [vmem:[#allocation5 + $0x128] sm:$0xff]  ;;  %v250_v6 = vld [vmem:[#allocation2 + $0x5f8] sm:$0xff] }
  0x8a   :  { %1471 = vmatprep.subr.bf16.mxu0 %v1470_v28  ;;  %1443 = vmatprep.subr.bf16.mxu1 %v1442_v29  ;;  %v1444_v38 = vpack.c.bf16 %v798_v40, %v791_v17  ;;  %v681_v26 = vmul.f32 %v457_v58, %v105_v2  ;;  %v688_v45 = vmul.f32 %v464_v48, %v112_v18  ;;  %v581_v31 = vunpack.c.l.bf16 %v380_v34  ;;  %v243_v0 = vld [vmem:[#allocation2 + $0x5c0] sm:$0xff]  ;;  %v400_v17 = vld [vmem:[#allocation5 + $0x334] sm:$0xff]  ;;  %v140_v29 = vld [vmem:[#allocation2 + $0x288] sm:$0xff] }
  0x8b   :  { %1473 = vmatpush1.bf16.msra.mxu0 %v1472_v47  ;;  %v689_v36 = vmul.f32 %v465_v22, %v113_v19  ;;  %v806_v37 = vmul.f32 %v582_v30, %v230_v60  ;;  %v813_v9 = vmul.f32 %v589_v53, %v237_v23  ;;  %v588_v10 = vunpack.c.l.bf16 %v384_v35  ;;  %v329_v43 = vld [vmem:[#allocation5 + $0x144] sm:$0xff]  ;;  %v134_v35 = vld [vmem:[#allocation2 + $0x258] sm:$0xff]  ;;  %v133_v28 = vld [vmem:[#allocation2 + $0x250] sm:$0xff] }
  0x8c   :  { %1445 = vmatpush1.bf16.msra.mxu1 %v1444_v38  ;;  %v1476_v54 = vpack.c.bf16 %v688_v45, %v681_v26  ;;  %v805_v44 = vmul.f32 %v581_v31, %v229_v55  ;;  %v471_v46 = vunpack.c.l.bf16 %v317_v1  ;;  %v472_v50 = vunpack.c.h.bf16 %v317_v1  ;;  %v396_v47 = vld [vmem:[#allocation5 + $0x318] sm:$0xff]  ;;  %v141_v60 = vld [vmem:[#allocation2 + $0x290] sm:$0xff]  ;;  %v333_v26 = vld [vmem:[#allocation5 + $0x160] sm:$0xff] }
  0x8d   :  { %v1474_v61 = vpack.c.bf16 %v689_v36, %v682_v27  ;;  %v1446_v3 = vpack.c.bf16 %v813_v9, %v806_v37  ;;  %v812_v15 = vmul.f32 %v588_v10, %v236_v63  ;;  %v478_v21 = vunpack.c.l.bf16 %v321_v33  ;;  %v258_v22 = vld [vmem:[#allocation2 + $0x638] sm:$0xff]  ;;  %v265_v27 = vld [vmem:[#allocation2 + $0x670] sm:$0xff] }
  0x8e   :  { %v479_v57 = vunpack.c.h.bf16 %v321_v33  ;;  %v696_v13 = vmul.f32 %v472_v50, %v120_v42  ;;  %v596_v14 = vunpack.c.h.bf16 %v388_v39  ;;  %v603_v24 = vunpack.c.h.bf16 %v392_v49  ;;  %v257_v38 = vld [vmem:[#allocation2 + $0x630] sm:$0xff]  ;;  %v264_v33 = vld [vmem:[#allocation2 + $0x668] sm:$0xff]  ;;  %v337_v37 = vld [vmem:[#allocation5 + $0x17c] sm:$0xff] }
  0x8f   :  { %1475 = vmatprep.subr.bf16.mxu0 %v1474_v61  ;;  %1447 = vmatprep.subr.bf16.mxu1 %v1446_v3  ;;  %v1448_v62 = vpack.c.bf16 %v812_v15, %v805_v44  ;;  %v695_v5 = vmul.f32 %v471_v46, %v119_v51  ;;  %v702_v16 = vmul.f32 %v478_v21, %v126_v52  ;;  %v595_v7 = vunpack.c.l.bf16 %v388_v39  ;;  %v408_v44 = vld [vmem:[#allocation5 + $0x36c] sm:$0xff]  ;;  %v147_v61 = vld [vmem:[#allocation2 + $0x2c0] sm:$0xff]  ;;  %v154_v3 = vld [vmem:[#allocation2 + $0x2f8] sm:$0xff] }
  0x90   :  { %1477 = vmatpush1.bf16.msra.mxu0 %v1476_v54  ;;  %v703_v41 = vmul.f32 %v479_v57, %v127_v20  ;;  %v820_v8 = vmul.f32 %v596_v14, %v244_v32  ;;  %v827_v11 = vmul.f32 %v603_v24, %v251_v56  ;;  %v602_v34 = vunpack.c.l.bf16 %v392_v49  ;;  %v148_v49 = vld [vmem:[#allocation2 + $0x2c8] sm:$0xff]  ;;  %v404_v54 = vld [vmem:[#allocation5 + $0x350] sm:$0xff]  ;;  %v155_v32 = vld [vmem:[#allocation2 + $0x300] sm:$0xff] }
  0x91   :  { %1449 = vmatpush1.bf16.msra.mxu1 %v1448_v62  ;;  %v1480_v58 = vpack.c.bf16 %v702_v16, %v695_v5  ;;  %v819_v59 = vmul.f32 %v595_v7, %v243_v0  ;;  %v485_v2 = vunpack.c.l.bf16 %v325_v4  ;;  %v486_v18 = vunpack.c.h.bf16 %v325_v4  ;;  %v272_v57 = vld [vmem:[#allocation2 + $0x6a8] sm:$0xff]  ;;  %v271_v62 = vld [vmem:[#allocation2 + $0x6a0] sm:$0xff]  ;;  %v341_v5 = vld [vmem:[#allocation5 + $0x198] sm:$0xff] }
  0x92   :  { %v1478_v40 = vpack.c.bf16 %v703_v41, %v696_v13  ;;  %v1450_v19 = vpack.c.bf16 %v827_v11, %v820_v8  ;;  %v826_v48 = vmul.f32 %v602_v34, %v250_v6  ;;  %v492_v23 = vunpack.c.l.bf16 %v329_v43  ;;  %v279_v13 = vld [vmem:[#allocation2 + $0x6e0] sm:$0xff]  ;;  %v345_v8 = vld [vmem:[#allocation5 + $0x1b4] sm:$0xff] }
  0x93   :  { %v493_v30 = vunpack.c.h.bf16 %v329_v43  ;;  %v710_v53 = vmul.f32 %v486_v18, %v134_v35  ;;  %v610_v55 = vunpack.c.h.bf16 %v396_v47  ;;  %v617_v1 = vunpack.c.h.bf16 %v400_v17  ;;  %v278_v43 = vld [vmem:[#allocation2 + $0x6d8] sm:$0xff] }
  0x94   :  { %1479 = vmatprep.subr.bf16.mxu0 %v1478_v40  ;;  %1451 = vmatprep.subr.bf16.mxu1 %v1450_v19  ;;  %v1452_v45 = vpack.c.bf16 %v826_v48, %v819_v59  ;;  %v709_v63 = vmul.f32 %v485_v2, %v133_v28  ;;  %v716_v31 = vmul.f32 %v492_v23, %v140_v29  ;;  %v609_v36 = vunpack.c.l.bf16 %v396_v47  ;;  %v350_v59 = vld [vmem:[#allocation5 + $0x1d8] ss:$28 sps:$4 sm:$0xff]   ;;  %v168_v40 = vld [vmem:[#allocation2 + $0x368] sm:$0xff] }
  0x95   :  { %1481 = vmatpush1.bf16.msra.mxu0 %v1480_v58  ;;  %v717_v9 = vmul.f32 %v493_v30, %v141_v60  ;;  %v834_v10 = vmul.f32 %v610_v55, %v258_v22  ;;  %v841_v42 = vmul.f32 %v617_v1, %v265_v27  ;;  %v616_v39 = vunpack.c.l.bf16 %v400_v17  ;;  %v162_v17 = vld [vmem:[#allocation2 + $0x338] sm:$0xff]  ;;  %v161_v58 = vld [vmem:[#allocation2 + $0x330] sm:$0xff] }
  0x96   :  { %1453 = vmatpush1.bf16.msra.mxu1 %v1452_v45  ;;  %v1484_v46 = vpack.c.bf16 %v716_v31, %v709_v63  ;;  %v833_v50 = vmul.f32 %v609_v36, %v257_v38  ;;  %v499_v51 = vunpack.c.l.bf16 %v333_v26  ;;  %v500_v52 = vunpack.c.h.bf16 %v333_v26  ;;  %v286_v19 = vld [vmem:[#allocation5 + $0x18] ss:$28 sps:$4 sm:$0xff]   ;;  %v184_v26 = vld [vmem:[#allocation2 + $0x3e8] sm:$0xff] }
  0x97   :  { %v1482_v15 = vpack.c.bf16 %v717_v9, %v710_v53  ;;  %v1454_v20 = vpack.c.bf16 %v841_v42, %v834_v10  ;;  %v840_v21 = vmul.f32 %v616_v39, %v264_v33  ;;  %v506_v56 = vunpack.c.l.bf16 %v337_v37  ;;  %v169_v22 = vld [vmem:[#allocation2 + $0x370] sm:$0xff]  ;;  %v176_v10 = vld [vmem:[#allocation2 + $0x3a8] sm:$0xff] }
  0x98   :  { %v507_v14 = vunpack.c.h.bf16 %v337_v37  ;;  %v724_v24 = vmul.f32 %v500_v52, %v148_v49  ;;  %v624_v0 = vunpack.c.h.bf16 %v404_v54  ;;  %v631_v4 = vunpack.c.h.bf16 %v408_v44  ;;  %v177_v30 = vld [vmem:[#allocation2 + $0x3b0] sm:$0xff]  ;;  %v72_v37 = vld [vmem:[#allocation2 + $0x68] sm:$0xff] }
  0x99   :  { %1483 = vmatprep.subr.bf16.mxu0 %v1482_v15  ;;  %1455 = vmatprep.subr.bf16.mxu1 %v1454_v20  ;;  %v1456_v16 = vpack.c.bf16 %v840_v21, %v833_v50  ;;  %v723_v6 = vmul.f32 %v499_v51, %v147_v61  ;;  %v730_v7 = vmul.f32 %v506_v56, %v154_v3  ;;  %v623_v41 = vunpack.c.l.bf16 %v404_v54  ;;  %v349_v53 = vld [vmem:[#allocation5 + $0x1d0] sm:$0xff]  ;;  %v1916_v51 = vld [vmem:[#allocation7 + $0x18] sm:$0xff]  ;;  %v183_v15 = vld [vmem:[#allocation2 + $0x3e0] sm:$0xff] }
  0x9a   :  { %1485 = vmatpush1.bf16.msra.mxu0 %v1484_v46  ;;  %v731_v11 = vmul.f32 %v507_v14, %v155_v32  ;;  %v848_v34 = vmul.f32 %v624_v0, %v272_v57  ;;  %v855_v35 = vmul.f32 %v631_v4, %v279_v13  ;;  %v630_v47 = vunpack.c.l.bf16 %v408_v44  ;;  %v65_v63 = vld [vmem:[#allocation2 + $0x30] sm:$0xff]  ;;  %v175_v46 = vld [vmem:[#allocation2 + $0x3a0] sm:$0xff]  ;;  %v182_v21 = vld [vmem:[#allocation2 + $0x3d8] sm:$0xff]  ;;  %935 = vmatprep.mubr.f32.mxu0 %v1916_v51 }
  0x9b   :  { %1457 = vmatpush1.bf16.msra.mxu1 %v1456_v16  ;;  %v1488_v2 = vpack.c.bf16 %v730_v7, %v723_v6  ;;  %v847_v18 = vmul.f32 %v623_v41, %v271_v62  ;;  %v513_v28 = vunpack.c.l.bf16 %v341_v5  ;;  %v514_v29 = vunpack.c.h.bf16 %v341_v5  ;;  %v353_v42 = vld [vmem:[#allocation5 + $0x1ec] sm:$0xff]  ;;  %v191_v32 = vld [vmem:[#allocation2 + $0x420] sm:$0xff]  ;;  %v198_v6 = vld [vmem:[#allocation2 + $0x458] sm:$0xff] }
  0x9c   :  { %v1486_v48 = vpack.c.bf16 %v731_v11, %v724_v24  ;;  %v1458_v60 = vpack.c.bf16 %v855_v35, %v848_v34  ;;  %v854_v23 = vmul.f32 %v630_v47, %v278_v43  ;;  %v520_v27 = vunpack.c.l.bf16 %v345_v8  ;;  %v358_v50 = vld [vmem:[#allocation5 + $0x210] ss:$28 sps:$4 sm:$0xff]   ;;  %v79_v34 = vld [vmem:[#allocation2 + $0xa0] sm:$0xff]  ;;  %v86_v35 = vld [vmem:[#allocation2 + $0xd8] sm:$0xff] }
  0x9d   :  { %v521_v55 = vunpack.c.h.bf16 %v345_v8  ;;  %v738_v1 = vmul.f32 %v514_v29, %v162_v17  ;;  %v737_v38 = vmul.f32 %v513_v28, %v161_v58  ;;  %v529_v45 = vunpack.c.l.bf16 %v350_v59  ;;  %v294_v24 = vld [vmem:[#allocation5 + $0x50] ss:$28 sps:$4 sm:$0xff]   ;;  %v361_v47 = vld [vmem:[#allocation5 + $0x224] sm:$0xff] }
  0x9e   :  { %1487 = vmatprep.subr.bf16.mxu0 %v1486_v48  ;;  %1459 = vmatprep.subr.bf16.mxu1 %v1458_v60  ;;  %v1460_v31 = vpack.c.bf16 %v854_v23, %v847_v18  ;;  %v744_v33 = vmul.f32 %v520_v27, %v168_v40  ;;  %v536_v36 = vunpack.c.h.bf16 %v350_v59  ;;  %v417_v9 = vunpack.c.l.bf16 %v286_v19  ;;  %v357_v0 = vld [vmem:[#allocation5 + $0x208] sm:$0xff]  ;;  %v1919_v4 = vld [vmem:[#allocation7 + $0x10] sm:$0xff] }
  0x9f   :  { %1489 = vmatpush1.bf16.msra.mxu0 %v1488_v2  ;;  %v745_v39 = vmul.f32 %v521_v55, %v169_v22  ;;  %v753_v49 = vmul.f32 %v529_v45, %v177_v30  ;;  %v424_v54 = vunpack.c.h.bf16 %v286_v19  ;;  %v527_v44 = vunpack.c.l.bf16 %v349_v53  ;;  %v190_v2 = vld [vmem:[#allocation2 + $0x418] sm:$0xff]  ;;  %v189_v28 = vld [vmem:[#allocation2 + $0x410] sm:$0xff]  ;;  %v366_v29 = vld [vmem:[#allocation5 + $0x248] ss:$28 sps:$4 sm:$0xff]  }
  0xa0   :  { %1461 = vmatpush1.bf16.msra.mxu1 %v1460_v31  ;;  %v1492_v52 = vpack.c.bf16 %v744_v33, %v737_v38  ;;  %v760_v61 = vmul.f32 %v536_v36, %v184_v26  ;;  %v641_v3 = vmul.f32 %v417_v9, %v65_v63  ;;  %v528_v20 = vunpack.c.h.bf16 %v349_v53  ;;  %936 = vmatmul.mubr.f32.gmra.mrb[2].mxu0 %v1919_v4  ;;  %v197_v48 = vld [vmem:[#allocation2 + $0x450] sm:$0xff]  ;;  %v196_v23 = vld [vmem:[#allocation2 + $0x448] sm:$0xff]  ;;  %v365_v26 = vld [vmem:[#allocation5 + $0x240] sm:$0xff] }
  0xa1   :  { %v1490_v56 = vpack.c.bf16 %v745_v39, %v738_v1  ;;  %v648_v57 = vmul.f32 %v424_v54, %v72_v37  ;;  %v534_v13 = vunpack.c.l.bf16 %v353_v42  ;;  %v535_v14 = vunpack.c.h.bf16 %v353_v42  ;;  %v1924_v22 = vld [vmem:[#allocation7 + $0x28] sm:$0x1f]  ;;  %v205_v1 = vld [vmem:[#allocation2 + $0x490] sm:$0xff]  ;;  %v369_v54 = vld [vmem:[#allocation5 + $0x25c] sm:$0xff] }
  0xa2   :  { %v1526_v62 = vpack.c.bf16 %v760_v61, %v753_v49  ;;  %v752_v5 = vmul.f32 %v528_v20, %v176_v10  ;;  %v751_v16 = vmul.f32 %v527_v44, %v175_v46  ;;  %v543_v7 = vunpack.c.l.bf16 %v358_v50  ;;  %v302_v38 = vld [vmem:[#allocation5 + $0x88] ss:$28 sps:$4 sm:$0xff]   ;;  %941 = vmatprep.mubr.f32.mxu0 %v1924_v22  ;;  %v93_v37 = vld [vmem:[#allocation2 + $0x110] sm:$0xff]  ;;  %v374_v20 = vld [vmem:[#allocation5 + $0x280] ss:$28 sps:$4 sm:$0xff]  }
  0xa3   :  { %1491 = vmatprep.subr.bf16.mxu0 %v1490_v56  ;;  %1013 = vmatmul.mubr.f32.vlgmr.msra.gmra.mrb[0].mxu1 %v1913_v12  ;;  %v1528_v43 = vpack.c.bf16 %v648_v57, %v641_v3  ;;  %v759_v41 = vmul.f32 %v535_v14, %v183_v15  ;;  %v758_v8 = vmul.f32 %v534_v13, %v182_v21  ;;  %v550_v11 = vunpack.c.h.bf16 %v358_v50  ;;  %v212_v33 = vld [vmem:[#allocation2 + $0x4c8] sm:$0xff]  ;;  %v1929_v44 = vld [vmem:[#allocation7 + $0x20] sm:$0x1f]  ;;  %v210_v14 = vld [vmem:[#allocation2 + $0x4b8] sm:$0xff] }
  0xa4   :  { %1493 = vmatpush1.bf16.msra.mxu0 %v1492_v52  ;;  %1527 = vmatprep.subr.bf16.mxu1 %v1526_v62  ;;  %v767_v17 = vmul.f32 %v543_v7, %v191_v32  ;;  %v431_v58 = vunpack.c.l.bf16 %v294_v24  ;;  %v438_v59 = vunpack.c.h.bf16 %v294_v24  ;;  %v541_v18 = vunpack.c.l.bf16 %v357_v0  ;;  %v100_v49 = vld [vmem:[#allocation2 + $0x148] sm:$0xff]  ;;  %v203_v15 = vld [vmem:[#allocation2 + $0x480] sm:$0xff]  ;;  %v373_v7 = vld [vmem:[#allocation5 + $0x278] sm:$0xff] }
  0xa5   :  { %1529 = vmatpush3.bf16.msra.mxu1 %v1528_v43  ;;  %v1494_v40 = vpack.c.bf16 %v759_v41, %v752_v5  ;;  %v1496_v19 = vpack.c.bf16 %v758_v8, %v751_v16  ;;  %v774_v12 = vmul.f32 %v550_v11, %v198_v6  ;;  %v542_v60 = vunpack.c.h.bf16 %v357_v0  ;;  %1018 = vmatprep.mubr.f32.mxu1 %v1916_v51  ;;  %v204_v61 = vld [vmem:[#allocation2 + $0x488] sm:$0xff]  ;;  %v211_v57 = vld [vmem:[#allocation2 + $0x4c0] sm:$0xff]  ;;  %v226_v11 = vld [vmem:[#allocation2 + $0x538] sm:$0xff] }
  0xa6   :  { %v655_v27 = vmul.f32 %v431_v58, %v79_v34  ;;  %v662_v30 = vmul.f32 %v438_v59, %v86_v35  ;;  %v548_v53 = vunpack.c.l.bf16 %v361_v47  ;;  %v549_v55 = vunpack.c.h.bf16 %v361_v47  ;;  %942 = vmatmul.mubr.f32.gmra.mrb[4].mxu0 %v1929_v44  ;;  %v219_v16 = vld [vmem:[#allocation2 + $0x500] sm:$0xff] }
  0xa7   :  { %1495 = vmatprep.subr.bf16.mxu0 %v1494_v40  ;;  %v1530_v45 = vpack.c.bf16 %v774_v12, %v767_v17  ;;  %v766_v63 = vmul.f32 %v542_v60, %v190_v2  ;;  %v765_v31 = vmul.f32 %v541_v18, %v189_v28  ;;  %v557_v36 = vunpack.c.l.bf16 %v366_v29  ;;  %1019 = vmatmul.mubr.f32.gmra.mrb[2].mxu1 %v1919_v4  ;;  %v310_v6 = vld [vmem:[#allocation5 + $0xc0] ss:$28 sps:$4 sm:$0xff]   ;;  %v377_v18 = vld [vmem:[#allocation5 + $0x294] sm:$0xff] }
  0xa8   :  { %1497 = vmatpush1.bf16.msra.mxu0 %v1496_v19  ;;  %v1532_v9 = vpack.c.bf16 %v662_v30, %v655_v27  ;;  %v773_v10 = vmul.f32 %v549_v55, %v197_v48  ;;  %v772_v42 = vmul.f32 %v548_v53, %v196_v23  ;;  %v564_v39 = vunpack.c.h.bf16 %v366_v29  ;;  %1024 = vmatprep.mubr.f32.mxu1 %v1924_v22  ;;  %v107_v59 = vld [vmem:[#allocation2 + $0x180] sm:$0xff]  ;;  %v114_v2 = vld [vmem:[#allocation2 + $0x1b8] sm:$0xff]  ;;  %v217_v48 = vld [vmem:[#allocation2 + $0x4f0] sm:$0xff] }
  0xa9   :  { %1531 = vmatprep.subr.bf16.mxu1 %v1530_v45  ;;  %v781_v46 = vmul.f32 %v557_v36, %v205_v1  ;;  %v445_v50 = vunpack.c.l.bf16 %v302_v38  ;;  %v452_v52 = vunpack.c.h.bf16 %v302_v38  ;;  %v555_v3 = vunpack.c.l.bf16 %v365_v26  ;;  %1095 = vmatprep.mubr.f32.mxu0 %v1891_v25  ;;  %v218_v19 = vld [vmem:[#allocation2 + $0x4f8] sm:$0xff]  ;;  %v225_v30 = vld [vmem:[#allocation2 + $0x530] sm:$0xff]  ;;  %v224_v55 = vld [vmem:[#allocation2 + $0x528] sm:$0xff] }
  0xaa   :  { %1533 = vmatpush3.bf16.msra.mxu1 %v1532_v9  ;;  %v1498_v21 = vpack.c.bf16 %v773_v10, %v766_v63  ;;  %v1500_v32 = vpack.c.bf16 %v772_v42, %v765_v31  ;;  %v788_v56 = vmul.f32 %v564_v39, %v212_v33  ;;  %v556_v13 = vunpack.c.h.bf16 %v365_v26  ;;  %v382_v60 = vld [vmem:[#allocation5 + $0x2b8] ss:$28 sps:$4 sm:$0xff]   ;;  %v240_v10 = vld [vmem:[#allocation2 + $0x5a8] sm:$0xff] }
  0xab   :  { %v669_v24 = vmul.f32 %v445_v50, %v93_v37  ;;  %v676_v0 = vmul.f32 %v452_v52, %v100_v49  ;;  %v562_v62 = vunpack.c.l.bf16 %v369_v54  ;;  %v563_v5 = vunpack.c.h.bf16 %v369_v54  ;;  %1025 = vmatmul.mubr.f32.gmra.mrb[4].mxu1 %v1929_v44  ;;  %v233_v63 = vld [vmem:[#allocation2 + $0x570] sm:$0xff]  ;;  %v128_v52 = vld [vmem:[#allocation2 + $0x228] sm:$0xff] }
  0xac   :  { %1499 = vmatprep.subr.bf16.mxu0 %v1498_v21  ;;  %v1534_v43 = vpack.c.bf16 %v788_v56, %v781_v46  ;;  %v780_v41 = vmul.f32 %v556_v13, %v204_v61  ;;  %v779_v8 = vmul.f32 %v555_v3, %v203_v15  ;;  %v571_v34 = vunpack.c.l.bf16 %v374_v20  ;;  %1178 = vmatprep.mubr.f32.mxu1 %v1891_v25  ;;  %v318_v31 = vld [vmem:[#allocation5 + $0xf8] ss:$28 sps:$4 sm:$0xff]   ;;  %v385_v61 = vld [vmem:[#allocation5 + $0x2cc] sm:$0xff]  ;;  %v231_v56 = vld [vmem:[#allocation2 + $0x560] sm:$0xff] }
  0xad   :  { %1501 = vmatpush1.bf16.msra.mxu0 %v1500_v32  ;;  %v1536_v35 = vpack.c.bf16 %v676_v0, %v669_v24  ;;  %v787_v47 = vmul.f32 %v563_v5, %v211_v57  ;;  %v786_v17 = vmul.f32 %v562_v62, %v210_v14  ;;  %v578_v58 = vunpack.c.h.bf16 %v374_v20  ;;  %v381_v33 = vld [vmem:[#allocation5 + $0x2b0] sm:$0xff]  ;;  %v232_v21 = vld [vmem:[#allocation2 + $0x568] sm:$0xff]  ;;  %v239_v0 = vld [vmem:[#allocation2 + $0x5a0] sm:$0xff] }
  0xae   :  { %1535 = vmatprep.subr.bf16.mxu1 %v1534_v43  ;;  %v795_v28 = vmul.f32 %v571_v34, %v219_v16  ;;  %v459_v29 = vunpack.c.l.bf16 %v310_v6  ;;  %v466_v40 = vunpack.c.h.bf16 %v310_v6  ;;  %v569_v12 = vunpack.c.l.bf16 %v373_v7  ;;  %v121_v50 = vld [vmem:[#allocation2 + $0x1f0] sm:$0xff]  ;;  %v238_v5 = vld [vmem:[#allocation2 + $0x598] sm:$0xff] }
  0xaf   :  { %1537 = vmatpush3.bf16.msra.mxu1 %v1536_v35  ;;  %v1502_v23 = vpack.c.bf16 %v787_v47, %v780_v41  ;;  %v1504_v27 = vpack.c.bf16 %v786_v17, %v779_v8  ;;  %v802_v25 = vmul.f32 %v578_v58, %v226_v11  ;;  %v570_v53 = vunpack.c.h.bf16 %v373_v7  ;;  %v390_v57 = vld [vmem:[#allocation5 + $0x2f0] ss:$28 sps:$4 sm:$0xff]   ;;  %v247_v41 = vld [vmem:[#allocation2 + $0x5e0] sm:$0xff]  ;;  %v254_v17 = vld [vmem:[#allocation2 + $0x618] sm:$0xff] }
  0xb0   :  { %v683_v1 = vmul.f32 %v459_v29, %v107_v59  ;;  %v690_v38 = vmul.f32 %v466_v40, %v114_v2  ;;  %v576_v26 = vunpack.c.l.bf16 %v377_v18  ;;  %v577_v45 = vunpack.c.h.bf16 %v377_v18  ;;  %v326_v8 = vld [vmem:[#allocation5 + $0x130] ss:$28 sps:$4 sm:$0xff]   ;;  %v135_v29 = vld [vmem:[#allocation2 + $0x260] sm:$0xff]  ;;  %v142_v40 = vld [vmem:[#allocation2 + $0x298] sm:$0xff] }
  0xb1   :  { %1503 = vmatprep.subr.bf16.mxu0 %v1502_v23  ;;  %v1538_v36 = vpack.c.bf16 %v802_v25, %v795_v28  ;;  %v794_v37 = vmul.f32 %v570_v53, %v218_v19  ;;  %v793_v9 = vmul.f32 %v569_v12, %v217_v48  ;;  %v585_v42 = vunpack.c.l.bf16 %v382_v60  ;;  %v389_v11 = vld [vmem:[#allocation5 + $0x2e8] sm:$0xff]  ;;  %v246_v23 = vld [vmem:[#allocation2 + $0x5d8] sm:$0xff]  ;;  %v245_v25 = vld [vmem:[#allocation2 + $0x5d0] sm:$0xff] }
  0xb2   :  { %1505 = vmatpush1.bf16.msra.mxu0 %v1504_v27  ;;  %v1540_v39 = vpack.c.bf16 %v690_v38, %v683_v1  ;;  %v801_v49 = vmul.f32 %v577_v45, %v225_v30  ;;  %v800_v54 = vmul.f32 %v576_v26, %v224_v55  ;;  %v592_v46 = vunpack.c.h.bf16 %v382_v60  ;;  %v393_v19 = vld [vmem:[#allocation5 + $0x304] sm:$0xff]  ;;  %v253_v38 = vld [vmem:[#allocation2 + $0x610] sm:$0xff] }
  0xb3   :  { %1539 = vmatprep.subr.bf16.mxu1 %v1538_v36  ;;  %v809_v3 = vmul.f32 %v585_v42, %v233_v63  ;;  %v473_v15 = vunpack.c.l.bf16 %v318_v31  ;;  %v480_v20 = vunpack.c.h.bf16 %v318_v31  ;;  %v583_v32 = vunpack.c.l.bf16 %v381_v33  ;;  %v398_v30 = vld [vmem:[#allocation5 + $0x328] ss:$28 sps:$4 sm:$0xff]  }
  0xb4   :  { %1541 = vmatpush3.bf16.msra.mxu1 %v1540_v39  ;;  %v1506_v13 = vpack.c.bf16 %v801_v49, %v794_v37  ;;  %v1508_v14 = vpack.c.bf16 %v800_v54, %v793_v9  ;;  %v816_v24 = vmul.f32 %v592_v46, %v240_v10  ;;  %v584_v62 = vunpack.c.h.bf16 %v381_v33  ;;  %v252_v45 = vld [vmem:[#allocation2 + $0x608] sm:$0xff]  ;;  %v261_v37 = vld [vmem:[#allocation2 + $0x650] sm:$0xff]  ;;  %v397_v10 = vld [vmem:[#allocation5 + $0x320] sm:$0xff] }
  0xb5   :  { %v697_v16 = vmul.f32 %v473_v15, %v121_v50  ;;  %v704_v6 = vmul.f32 %v480_v20, %v128_v52  ;;  %v590_v7 = vunpack.c.l.bf16 %v385_v61  ;;  %v591_v43 = vunpack.c.h.bf16 %v385_v61  ;;  %v334_v9 = vld [vmem:[#allocation5 + $0x168] ss:$28 sps:$4 sm:$0xff]   ;;  %v149_v15 = vld [vmem:[#allocation2 + $0x2d0] sm:$0xff] }
  0xb6   :  { %1507 = vmatprep.subr.bf16.mxu0 %v1506_v13  ;;  %v1542_v34 = vpack.c.bf16 %v816_v24, %v809_v3  ;;  %v808_v35 = vmul.f32 %v584_v62, %v232_v21  ;;  %v807_v47 = vmul.f32 %v583_v32, %v231_v56  ;;  %v599_v58 = vunpack.c.l.bf16 %v390_v57  ;;  %v268_v54 = vld [vmem:[#allocation2 + $0x688] sm:$0xff]  ;;  %v401_v21 = vld [vmem:[#allocation5 + $0x33c] sm:$0xff] }
  0xb7   :  { %1509 = vmatpush1.bf16.msra.mxu0 %v1508_v14  ;;  %v1544_v59 = vpack.c.bf16 %v704_v6, %v697_v16  ;;  %v815_v2 = vmul.f32 %v591_v43, %v239_v0  ;;  %v814_v18 = vmul.f32 %v590_v7, %v238_v5  ;;  %v606_v28 = vunpack.c.h.bf16 %v390_v57  ;;  %v156_v20 = vld [vmem:[#allocation2 + $0x308] sm:$0xff]  ;;  %v259_v24 = vld [vmem:[#allocation2 + $0x640] sm:$0xff]  ;;  %v266_v43 = vld [vmem:[#allocation2 + $0x678] sm:$0xff] }
  0xb8   :  { %1543 = vmatprep.subr.bf16.mxu1 %v1542_v34  ;;  %v823_v12 = vmul.f32 %v599_v58, %v247_v41  ;;  %v487_v48 = vunpack.c.l.bf16 %v326_v8  ;;  %v494_v60 = vunpack.c.h.bf16 %v326_v8  ;;  %v597_v27 = vunpack.c.l.bf16 %v389_v11  ;;  %v260_v13 = vld [vmem:[#allocation2 + $0x648] sm:$0xff]  ;;  %v406_v0 = vld [vmem:[#allocation5 + $0x360] ss:$28 sps:$4 sm:$0xff]  }
  0xb9   :  { %1545 = vmatpush3.bf16.msra.mxu1 %v1544_v59  ;;  %v1510_v53 = vpack.c.bf16 %v815_v2, %v808_v35  ;;  %v1512_v55 = vpack.c.bf16 %v814_v18, %v807_v47  ;;  %v830_v1 = vmul.f32 %v606_v28, %v254_v17  ;;  %v598_v26 = vunpack.c.h.bf16 %v389_v11  ;;  %v267_v6 = vld [vmem:[#allocation2 + $0x680] sm:$0xff]  ;;  %v405_v17 = vld [vmem:[#allocation5 + $0x358] sm:$0xff] }
  0xba   :  { %v711_v63 = vmul.f32 %v487_v48, %v135_v29  ;;  %v718_v31 = vmul.f32 %v494_v60, %v142_v40  ;;  %v604_v33 = vunpack.c.l.bf16 %v393_v19  ;;  %v605_v36 = vunpack.c.h.bf16 %v393_v19  ;;  %v275_v35 = vld [vmem:[#allocation2 + $0x6c0] sm:$0xff]  ;;  %v282_v18 = vld [vmem:[#allocation2 + $0x6f8] sm:$0xff] }
  0xbb   :  { %1511 = vmatprep.subr.bf16.mxu0 %v1510_v53  ;;  %v1546_v42 = vpack.c.bf16 %v830_v1, %v823_v12  ;;  %v822_v39 = vmul.f32 %v598_v26, %v246_v23  ;;  %v821_v49 = vmul.f32 %v597_v27, %v245_v25  ;;  %v613_v46 = vunpack.c.l.bf16 %v398_v30  ;;  %v342_v47 = vld [vmem:[#allocation5 + $0x1a0] ss:$28 sps:$4 sm:$0xff]   ;;  %v409_v23 = vld [vmem:[#allocation5 + $0x374] sm:$0xff] }
  0xbc   :  { %1513 = vmatpush1.bf16.msra.mxu0 %v1512_v55  ;;  %v1548_v50 = vpack.c.bf16 %v718_v31, %v711_v63  ;;  %v829_v52 = vmul.f32 %v605_v36, %v253_v38  ;;  %v828_v61 = vmul.f32 %v604_v33, %v252_v45  ;;  %v620_v3 = vunpack.c.h.bf16 %v398_v30  ;;  %v163_v48 = vld [vmem:[#allocation2 + $0x340] sm:$0xff]  ;;  %v170_v60 = vld [vmem:[#allocation2 + $0x378] sm:$0xff]  ;;  %v273_v1 = vld [vmem:[#allocation2 + $0x6b0] sm:$0xff] }
  0xbd   :  { %1547 = vmatprep.subr.bf16.mxu1 %v1546_v42  ;;  %v837_v32 = vmul.f32 %v613_v46, %v261_v37  ;;  %v501_v56 = vunpack.c.l.bf16 %v334_v9  ;;  %v508_v57 = vunpack.c.h.bf16 %v334_v9  ;;  %v611_v14 = vunpack.c.l.bf16 %v397_v10  ;;  %v274_v53 = vld [vmem:[#allocation2 + $0x6b8] sm:$0xff]  ;;  %v281_v63 = vld [vmem:[#allocation2 + $0x6f0] sm:$0xff]  ;;  %v280_v33 = vld [vmem:[#allocation2 + $0x6e8] sm:$0xff] }
  0xbe   :  { %1549 = vmatpush3.bf16.msra.mxu1 %v1548_v50  ;;  %v1514_v62 = vpack.c.bf16 %v829_v52, %v822_v39  ;;  %v1516_v5 = vpack.c.bf16 %v828_v61, %v821_v49  ;;  %v844_v16 = vmul.f32 %v620_v3, %v268_v54  ;;  %v612_v7 = vunpack.c.h.bf16 %v397_v10  ;;  %v1215_v42 = vld [vmem:[%s1988_s3] sm:$0xff]  ;;  %v1217_v3 = vld [vmem:[%s1988_s3 + $0x10] sm:$0x1f] }
  0xbf   :  { %v725_v41 = vmul.f32 %v501_v56, %v149_v15  ;;  %v732_v8 = vmul.f32 %v508_v57, %v156_v20  ;;  %v618_v11 = vunpack.c.l.bf16 %v401_v21  ;;  %v619_v34 = vunpack.c.h.bf16 %v401_v21  ;;  %v1216_v21 = vld [vmem:[%s1988_s3 + $0x8] sm:$0xff]  ;;  %s1676_s3 = smov [#allocation8]  }
  0xc0   :  { %1515 = vmatprep.subr.bf16.mxu0 %v1514_v62  ;;  %v1550_v58 = vpack.c.bf16 %v844_v16, %v837_v32  ;;  %v836_v59 = vmul.f32 %v612_v7, %v260_v13  ;;  %v835_v2 = vmul.f32 %v611_v14, %v259_v24  ;;  %v627_v28 = vunpack.c.l.bf16 %v406_v0  ;;  %v1571_v32 = vld [vmem:[#allocation7] sm:$0xff]  ;;  %s1280_s8 = sshll.u32 %s1676_s3, 4  ;;  %s1281_s8 = int_to_ptr.vmem [resolvable:$true] %s1280_s8 }
  0xc1   :  { %1517 = vmatpush1.bf16.msra.mxu0 %v1516_v5  ;;  %v1552_v29 = vpack.c.bf16 %v732_v8, %v725_v41  ;;  %v843_v40 = vmul.f32 %v619_v34, %v267_v6  ;;  %v842_v19 = vmul.f32 %v618_v11, %v266_v43  ;;  %v634_v12 = vunpack.c.h.bf16 %v406_v0  ;;  %s1638_s9 = scalar_lea.vmem %s1281_s8, 2688  ;;  %p1643_p11 = scmp.lt.s32.totalorder %s1281_s8, %s1281_s8 }
  0xc2   :  { %1551 = vmatprep.subr.bf16.mxu1 %v1550_v58  ;;  %v851_v27 = vmul.f32 %v627_v28, %v275_v35  ;;  %v515_v25 = vunpack.c.l.bf16 %v342_v47  ;;  %v522_v30 = vunpack.c.h.bf16 %v342_v47  ;;  %v625_v55 = vunpack.c.l.bf16 %v405_v17  ;;  %p1639_p10 = scmp.ne.s32.totalorder %s1281_s8, %s1638_s9  ;;  %p1644_p12 = scmp.lt.s32.totalorder %s1638_s9, %s1638_s9 }
  0xc3   :  { %1553 = vmatpush3.bf16.msra.mxu1 %v1552_v29  ;;  %v1518_v38 = vpack.c.bf16 %v843_v40, %v836_v59  ;;  %v1520_v26 = vpack.c.bf16 %v842_v19, %v835_v2  ;;  %v858_v45 = vmul.f32 %v634_v12, %v282_v18  ;;  %v626_v31 = vunpack.c.h.bf16 %v405_v17 }
  0xc4   :  { %v739_v36 = vmul.f32 %v515_v25, %v163_v48  ;;  %v746_v37 = vmul.f32 %v522_v30, %v170_v60  ;;  %v632_v9 = vunpack.c.l.bf16 %v409_v23  ;;  %v633_v10 = vunpack.c.h.bf16 %v409_v23  ;;  %p1645_p13 = por %p1644_p12, %p1643_p11 }
  0xc5   :  { %1519 = vmatprep.subr.bf16.mxu0 %v1518_v38  ;;  %v1554_v39 = vpack.c.bf16 %v858_v45, %v851_v27  ;;  %v850_v49 = vmul.f32 %v626_v31, %v274_v53  ;;  %v849_v54 = vmul.f32 %v625_v55, %v273_v1  ;;  %v1675_v61 = vmov 0  }
  0xc6   :  { %1521 = vmatpush1.bf16.msra.mxu0 %v1520_v26  ;;  %v1556_v46 = vpack.c.bf16 %v746_v37, %v739_v36  ;;  %v857_v50 = vmul.f32 %v633_v10, %v281_v63  ;;  %v856_v52 = vmul.f32 %v632_v9, %v280_v33  ;;  %1569 = vset.pattern.permute.xlu0 %v1675_v61  ;;  %p1646_p0 = pnand %p1645_p13, %p1639_p10 }
  0xc7   :  { %1555 = vmatprep.subr.bf16.mxu1 %v1554_v39  ;;  %1220 = vperm.xlu0 %1569, %v1215_v42  }
  0xc8   :  { %1557 = vmatpush3.bf16.msra.mxu1 %v1556_v46  ;;  %v1522_v15 = vpack.c.bf16 %v857_v50, %v850_v49  ;;  %v1524_v20 = vpack.c.bf16 %v856_v52, %v849_v54  ;;  %1570 = vset.pattern.permute.xlu1 %v1675_v61 }
  0xc9   :  { %1230 = vperm.xlu1 %1570, %v1217_v3  }
  0xca   :  { %1523 = vmatprep.subr.bf16.mxu0 %v1522_v15 }
  0xcb   :  { %1525 = vmatpush1.bf16.msra.mxu0 %v1524_v20  ;;  %1179 = vmatmul.mubr.f32.vlgmr.msra.gmra.mrb[6].mxu1 %v1571_v32 }
  0xcc   :  { %1183 = vmatprep.mubr.f32.mxu1 %v1916_v51  ;;  %1225 = vperm.xlu0 %1569, %v1216_v21  }
  0xce   :  { %1096 = vmatmul.mubr.f32.vlgmr.msra.gmra.mrb[6].mxu0 %v1571_v32 }
  0xcf   :  { %1184 = vmatmul.mubr.f32.gmra.mrb[8].mxu1 %v1919_v4  ;;  %1101 = vmatprep.mubr.f32.mxu0 %v1916_v51 }
  0xd0   :  { %1188 = vmatprep.mubr.f32.mxu1 %v1924_v22 }
  0xd2   :  { %1102 = vmatmul.mubr.f32.gmra.mrb[8].mxu0 %v1919_v4 }
  0xd3   :  { %1189 = vmatmul.mubr.f32.gmra.mrb[10].mxu1 %v1929_v44  ;;  %1107 = vmatprep.mubr.f32.mxu0 %v1924_v22 }
  0xd6   :  { %1108 = vmatmul.mubr.f32.gmra.mrb[10].mxu0 %v1929_v44 }
 0x146   :  { %v1952_v57 = vpop.permute.xlu0 %1220 }
 0x148   :  { %v1231_v19 = vpop.permute.xlu1 %1230 }
 0x14b   :  { %v1956_v7 = vpop.permute.xlu0 %1225 }
 0x154   :  { %v931_v56 = vpop.f32.mrb[0].mxu0 }
 0x155   :  { %v1194_v13 = vmul.f32 1.1111112, %v931_v56  ;;  %v933_v14 = vpop.f32.mrb[1].mxu0 }
 0x156   :  { %v1195_v24 = vmul.f32 1.1111112, %v933_v14 }
 0x157   :  { %v1233_v0 = vadd.f32 %v1952_v57, %v1194_v13 }
 0x158   :  { %v1234_v51 = vadd.f32 %v1952_v57, %v1195_v24 }
 0x159   :  { %1254 = vst [vmem:[#allocation8] sm:$0xff] %v1233_v0 }
 0x15a   :  { %1255 = vst [vmem:[#allocation8 + $0x8] sm:$0xff] %v1234_v51 }
 0x173   :  { %v937_v62 = vpop.f32.mrb[2].mxu0 }
 0x174   :  { %v1201_v5 = vmul.f32 1.1111112, %v937_v62  ;;  %v939_v16 = vpop.f32.mrb[3].mxu0 }
 0x175   :  { %v1202_v44 = vmul.f32 1.1111112, %v939_v16 }
 0x176   :  { %v1014_v4 = vpop.f32.mrb[0].mxu1  ;;  %v1240_v41 = vadd.f32 %v1956_v7, %v1201_v5 }
 0x177   :  { %v1196_v6 = vmul.f32 1.1111112, %v1014_v4  ;;  %v1016_v22 = vpop.f32.mrb[1].mxu1  ;;  %v1241_v11 = vadd.f32 %v1956_v7, %v1202_v44 }
 0x178   :  { %v1197_v43 = vmul.f32 1.1111112, %v1016_v22  ;;  %1261 = vst [vmem:[#allocation8 + $0x38] sm:$0xff] %v1240_v41 }
 0x179   :  { %v1235_v8 = vadd.f32 %v1952_v57, %v1196_v6  ;;  %1262 = vst [vmem:[#allocation8 + $0x40] sm:$0xff] %v1241_v11  ;;  %v943_v59 = vpop.f32.mrb[4].mxu0 }
 0x17a   :  { %v1236_v34 = vadd.f32 %v1952_v57, %v1197_v43  ;;  %v1020_v35 = vpop.f32.mrb[2].mxu1  ;;  %v1208_v18 = vmul.f32 1.1111112, %v943_v59  ;;  %v945_v28 = vpop.f32.mrb[5].mxu0 }
 0x17b   :  { %1256 = vst [vmem:[#allocation8 + $0x10] sm:$0xff] %v1235_v8  ;;  %v1203_v47 = vmul.f32 1.1111112, %v1020_v35  ;;  %v1022_v17 = vpop.f32.mrb[3].mxu1  ;;  %v1209_v12 = vmul.f32 1.1111112, %v945_v28 }
 0x17c   :  { %1257 = vst [vmem:[#allocation8 + $0x18] sm:$0xff] %v1236_v34  ;;  %v1204_v58 = vmul.f32 1.1111112, %v1022_v17  ;;  %v1247_v23 = vadd.f32 %v1231_v19, %v1208_v18 }
 0x17d   :  { %v1242_v2 = vadd.f32 %v1956_v7, %v1203_v47  ;;  %v1248_v25 = vadd.f32 %v1231_v19, %v1209_v12 }
 0x17e   :  { %v1243_v29 = vadd.f32 %v1956_v7, %v1204_v58  ;;  %v1026_v40 = vpop.f32.mrb[4].mxu1  ;;  %1268 = vst [vmem:[#allocation8 + $0x70] sm:$0x1f] %v1247_v23 }
 0x17f   :  { %1263 = vst [vmem:[#allocation8 + $0x48] sm:$0xff] %v1242_v2  ;;  %v1210_v48 = vmul.f32 1.1111112, %v1026_v40  ;;  %v1028_v60 = vpop.f32.mrb[5].mxu1  ;;  %1269 = vst [vmem:[#allocation8 + $0x78] sm:$0x1f] %v1248_v25 }
 0x180   :  { %1264 = vst [vmem:[#allocation8 + $0x50] sm:$0xff] %v1243_v29  ;;  %v1211_v27 = vmul.f32 1.1111112, %v1028_v60 }
 0x181   :  { %v1249_v30 = vadd.f32 %v1231_v19, %v1210_v48 }
 0x182   :  { %v1250_v53 = vadd.f32 %v1231_v19, %v1211_v27 }
 0x183   :  { %1270 = vst [vmem:[#allocation8 + $0x80] sm:$0x1f] %v1249_v30 }
 0x184   :  { %1271 = vst [vmem:[#allocation8 + $0x88] sm:$0x1f] %v1250_v53 }
 0x19e   :  { %v1325_v55 = vpop.f32.mrb[6].mxu1 }
 0x19f   :  { %v1326_v1 = vpop.f32.mrb[7].mxu1 }
 0x1a0   :  { %v1327_v38 = vadd.f32 %v1326_v1, %v1325_v55 }
 0x1a1   :  { %v1097_v26 = vpop.f32.mrb[6].mxu0 }
 0x1a2   :  { %v1200_v45 = vmul.f32 1.1111112, %v1327_v38  ;;  %v1198_v63 = vmul.f32 1.1111112, %v1097_v26  ;;  %v1099_v31 = vpop.f32.mrb[7].mxu0  ;;  %v1328_v33 = vpop.f32.mrb[8].mxu1 }
 0x1a3   :  { %v1199_v36 = vmul.f32 1.1111112, %v1099_v31  ;;  %v1329_v37 = vpop.f32.mrb[9].mxu1 }
 0x1a4   :  { %v1239_v9 = vadd.f32 %v1952_v57, %v1200_v45  ;;  %v1237_v10 = vadd.f32 %v1952_v57, %v1198_v63  ;;  %v1330_v42 = vadd.f32 %v1329_v37, %v1328_v33 }
 0x1a5   :  { %v1238_v39 = vadd.f32 %v1952_v57, %v1199_v36  ;;  %v1103_v49 = vpop.f32.mrb[8].mxu0 }
 0x1a6   :  { %1260 = vst [vmem:[#allocation8 + $0x30] sm:$0xff] %v1239_v9  ;;  %1258 = vst [vmem:[#allocation8 + $0x20] sm:$0xff] %v1237_v10  ;;  %v1207_v54 = vmul.f32 1.1111112, %v1330_v42  ;;  %v1205_v46 = vmul.f32 1.1111112, %v1103_v49 }
 0x1a7   :  { %v1105_v50 = vpop.f32.mrb[9].mxu0  ;;  %v1331_v52 = vpop.f32.mrb[10].mxu1  ;;  %1259 = vst [vmem:[#allocation8 + $0x28] sm:$0xff] %v1238_v39 }
 0x1a8   :  { %v1206_v61 = vmul.f32 1.1111112, %v1105_v50  ;;  %v1332_v3 = vpop.f32.mrb[11].mxu1  ;;  %v1246_v15 = vadd.f32 %v1956_v7, %v1207_v54  ;;  %v1244_v20 = vadd.f32 %v1956_v7, %v1205_v46 }
 0x1a9   :  { %v1333_v21 = vadd.f32 %v1332_v3, %v1331_v52  ;;  %v1109_v56 = vpop.f32.mrb[10].mxu0 }
 0x1aa   :  { %v1245_v32 = vadd.f32 %v1956_v7, %v1206_v61  ;;  %1267 = vst [vmem:[#allocation8 + $0x68] sm:$0xff] %v1246_v15  ;;  %1265 = vst [vmem:[#allocation8 + $0x58] sm:$0xff] %v1244_v20  ;;  %v1212_v13 = vmul.f32 1.1111112, %v1109_v56  ;;  %v1111_v14 = vpop.f32.mrb[11].mxu0 }
 0x1ab   :  { %v1214_v57 = vmul.f32 1.1111112, %v1333_v21  ;;  %v1213_v24 = vmul.f32 1.1111112, %v1111_v14 }
 0x1ac   :  { %1266 = vst [vmem:[#allocation8 + $0x60] sm:$0xff] %v1245_v32  ;;  %v1251_v51 = vadd.f32 %v1231_v19, %v1212_v13 }
 0x1ad   :  { %v1253_v0 = vadd.f32 %v1231_v19, %v1214_v57  ;;  %v1252_v62 = vadd.f32 %v1231_v19, %v1213_v24 }
 0x1ae   :  { %1272 = vst [vmem:[#allocation8 + $0x90] sm:$0x1f] %v1251_v51 }
 0x1af   :  { %1274 = vst [vmem:[#allocation8 + $0xa0] sm:$0x1f] %v1253_v0  ;;  %1273 = vst [vmem:[#allocation8 + $0x98] sm:$0x1f] %v1252_v62 }
 0x1b0   :  { %1649 = shalt.err (!%p1646_p0)
}
 0x1b1   :  { %s1650_s12 = scalar_lea.hbm %s1989_s4, 2688 }
 0x1b2   :  { %p1651_p1 = scmp.ne.s32.totalorder %s1989_s4, %s1650_s12  ;;  %p1654_p2 = scmp.lt.u32.totalorder %s1650_s12, %s1989_s4 }
 0x1b4   :  { %p1656_p3 = pnand %p1654_p2, %p1651_p1 }
 0x1b6   :  { %1659 = shalt.err (!%p1656_p3)
}
 0x1b7   :  { %1286 = dma.vmem_to_hbm [thread:$0]  %s1281_s8, 2688, %s1989_s4, [#allocation4], %s1670_s1, %s1670_s1, %s1671_s13  }
 0x1b8   :  { %1664 = dma.done.wait [#allocation4], 2688  }
 0x1b9   :  { %1665 = vsyncadd [#allocation4], 4294964608 }
 0x1ba   :  { %1290 = vsyncpa [#allocation3], 1 }
 0x1bb   :  { %1291 = vsyncpa [#allocation6], 1 }
 0x1bc   :  { %1292 = vsyncpa [#allocation4], 1 }

</bundles_post_ra>
